<compile_context>
chip_gen: v5e
topology: v5e:2x2
jax: 0.10.0
libtpu: 0.0.40
codegen_flags: <defaults>
</compile_context>

<pallas_src>
import jax
import jax.numpy as jnp
from jax.experimental import pallas as pl
from jax.experimental.pallas import tpu as pltpu

GROUPS = 32
EPS = 1e-6


def _tile4(v):
    # (1, C) -> (1, 4C): same per-channel vector for all 4 sub-pixel phase blocks.
    return jnp.concatenate([v, v, v, v], axis=1)


def _sum_phase_blocks(row, cout):
    # (1, 4*Cout) -> (1, Cout): reduce the 4 phase column blocks per channel.
    return (row[:, :cout] + row[:, cout:2 * cout]
            + row[:, 2 * cout:3 * cout] + row[:, 3 * cout:])


def _gn_scale_shift(col_sum, col_sq, count, gamma, beta, cout):
    """Per-channel GroupNorm scale/shift from per-channel sum / sum-of-squares."""
    cpg = cout // GROUPS
    if cpg > 1:   # combine channels of a group (demo uses cpg == 1)
        gs = jnp.sum(col_sum.reshape(GROUPS, cpg), axis=1, keepdims=True)
        col_sum = jnp.broadcast_to(gs, (GROUPS, cpg)).reshape(1, cout)
        gq = jnp.sum(col_sq.reshape(GROUPS, cpg), axis=1, keepdims=True)
        col_sq = jnp.broadcast_to(gq, (GROUPS, cpg)).reshape(1, cout)
    mean = col_sum / count
    var = jnp.maximum(col_sq / count - mean * mean, 0.0)
    inv = jax.lax.rsqrt(var + EPS)
    scale = gamma * inv
    shift = beta - mean * scale
    return scale, shift


def _fused_upsample_kernel(x_ref, w1_ref, b1_ref, g1_ref, bt1_ref,
                           w2_ref, b2_ref, g2_ref, bt2_ref, o_ref):
    """One batch sample, entirely in VMEM.

    x_ref  : (1, H, W, Cin)        bf16 unpadded NHWC input
    w1_ref : (4*Cin, 4*Cout)       bf16 phase/neighbour-packed ConvTranspose weights
    w2_ref : (9, 4*Cout, 4*Cout)   bf16 conv2 re-packed as a 3x3 conv over the
                                   phase-packed map (tap t = (di+1)*3 + (dj+1))
    b*/g*/bt* : (1, Cout)          f32 conv bias / GN gamma / GN beta
    o_ref  : (1, H, W, 4*Cout)     bf16 lane-dense phase-packed output:
             o[0, u, v, (2*qy+qx)*Cout + c] == out[2u+qy, 2v+qx, c]
    """
    _, H, W, Cin = x_ref.shape
    C4 = o_ref.shape[3]          # 4 * Cout (128 lanes for Cout=32)
    Cout = C4 // 4
    HW = H * W
    cpg = Cout // GROUPS
    count = 4.0 * HW * cpg       # GN reduces over the full 2H x 2W map per group

    # -------- stage 1: ConvTranspose2d(s=2) via sub-pixel phases, ONE matmul ----
    x = x_ref[0]                                             # (H, W, Cin) bf16
    zr = jnp.zeros((1, W, Cin), x.dtype)
    zc = jnp.zeros((H, 1, Cin), x.dtype)
    x_d = jnp.concatenate([x[1:], zr], axis=0)               # x[i+1, j]
    x_r = jnp.concatenate([x[:, 1:], zc], axis=1)            # x[i, j+1]
    x_dr = jnp.concatenate([x_d[:, 1:], zc], axis=1)         # x[i+1, j+1]
    # neighbour order (di, dj) = (0,0),(0,1),(1,0),(1,1)  ->  K = 4*Cin = 128
    m1 = jnp.concatenate([x, x_r, x_d, x_dr], axis=-1).reshape(HW, 4 * Cin)

    y1 = jnp.dot(m1, w1_ref[...], preferred_element_type=jnp.float32)  # (HW, 4*Cout)
    y1 = y1 + _tile4(b1_ref[...])

    # GroupNorm1 + SiLU + bf16 cast, applied once in the phase-packed layout.
    s1 = jnp.sum(y1, axis=0, keepdims=True)
    q1 = jnp.sum(y1 * y1, axis=0, keepdims=True)
    sc1, sh1 = _gn_scale_shift(_sum_phase_blocks(s1, Cout),
                               _sum_phase_blocks(q1, Cout),
                               count, g1_ref[...], bt1_ref[...], Cout)
    y1 = y1 * _tile4(sc1) + _tile4(sh1)
    y1 = y1 * jax.nn.sigmoid(y1)                              # SiLU
    a1 = y1.astype(jnp.bfloat16).reshape(H, W, C4)            # phase-packed activation

    # -------- stage 2: Conv2d 3x3 (pad 1) on the 2Hx2W grid == a 3x3 conv with
    #          4*Cout in/out channels on the phase-packed (H, W, 4*Cout) map.
    #          9 taps, each an accumulated (HW,128)x(128,128) matmul; no im2col.
    zrow = jnp.zeros((1, W, C4), jnp.bfloat16)
    zcol = jnp.zeros((H, 1, C4), jnp.bfloat16)
    rows = {
        -1: jnp.concatenate([zrow, a1[:-1]], axis=0),         # a1[u-1, v]
        0: a1,
        1: jnp.concatenate([a1[1:], zrow], axis=0),           # a1[u+1, v]
    }

    def col_shift(a, dj):                                     # result[v] = a[v+dj]
        if dj == 0:
            return a
        if dj == 1:
            return jnp.concatenate([a[:, 1:], zcol], axis=1)
        return jnp.concatenate([zcol, a[:, :-1]], axis=1)

    y2 = jnp.zeros((HW, C4), jnp.float32)
    t = 0
    for di in (-1, 0, 1):
        for dj in (-1, 0, 1):
            tap = col_shift(rows[di], dj).reshape(HW, C4)     # (HW, 128) bf16
            y2 = y2 + jnp.dot(tap, w2_ref[t],
                              preferred_element_type=jnp.float32)
            t += 1
    y2 = y2 + _tile4(b2_ref[...])

    # GroupNorm2 + SiLU, store lane-dense bf16.
    s2 = jnp.sum(y2, axis=0, keepdims=True)
    q2 = jnp.sum(y2 * y2, axis=0, keepdims=True)
    sc2, sh2 = _gn_scale_shift(_sum_phase_blocks(s2, Cout),
                               _sum_phase_blocks(q2, Cout),
                               count, g2_ref[...], bt2_ref[...], Cout)
    y2 = y2 * _tile4(sc2) + _tile4(sh2)
    y2 = y2 * jax.nn.sigmoid(y2)
    o_ref[0] = y2.reshape(H, W, C4).astype(o_ref.dtype)


def pack_params(params, stride):
    """Pre-pack weights once (hoisted out of the forward path)."""
    assert stride == 2, "only stride=2 is implemented"
    # TODO(synk): general stride needs an s^2-phase decomposition of ConvTranspose2d.
    wt = params["conv1_w"]                                  # (Cin, Cout, 3, 3) torch layout
    Cin, Cout = wt.shape[0], wt.shape[1]
    assert Cout % GROUPS == 0
    assert params["norm1_g"].shape[0] == Cout, \
        "norm1 runs on conv1's output; module requires in_channels == out_channels"

    # forward-conv-equivalent weight of the transposed conv (spatial flip + io swap)
    w1_eq = jnp.transpose(wt[:, :, ::-1, ::-1], (2, 3, 0, 1))   # (3, 3, Cin, Cout)
    zero_ic = jnp.zeros((Cin, Cout), w1_eq.dtype)

    def tap(phase, d):
        # kernel index (in flipped w1_eq) along one spatial dim feeding output
        # sub-pixel `phase` from input neighbour offset d in {0,1}; None if unused.
        if phase == 0:
            return 1 if d == 0 else None
        return 0 if d == 0 else 2

    cols = []
    for py in (0, 1):
        for px in (0, 1):
            blocks = []
            for di in (0, 1):
                for dj in (0, 1):
                    ky, kx = tap(py, di), tap(px, dj)
                    blocks.append(zero_ic if ky is None or kx is None else w1_eq[ky, kx])
            cols.append(jnp.concatenate(blocks, axis=0))        # (4*Cin, Cout)
    w1p = jnp.concatenate(cols, axis=1).astype(jnp.bfloat16)    # (4*Cin, 4*Cout)

    # conv2 (regular 3x3 on the 2Hx2W grid) re-expressed as a 3x3 conv with
    # 4*Cout in/out channels on the phase-packed low-res map:
    #   W_pp[di+1,dj+1][(2py+px)*C + ci, (2qy+qx)*C + co] = w2_eq[ky,kx,ci,co]
    #   with ky = 2*di + py - qy + 1, kx = 2*dj + px - qx + 1 (0 if out of [0,2]).
    w2_eq = jnp.transpose(params["conv2_w"], (2, 3, 1, 0))      # (3, 3, Cin2, Cout) HWIO
    zero_cc = jnp.zeros((Cout, Cout), w2_eq.dtype)
    taps = []
    for di in (-1, 0, 1):
        for dj in (-1, 0, 1):
            col_blocks = []
            for qy in (0, 1):
                for qx in (0, 1):
                    row_blocks = []
                    for py in (0, 1):
                        for px in (0, 1):
                            ky = 2 * di + py - qy + 1
                            kx = 2 * dj + px - qx + 1
                            ok = (0 <= ky <= 2) and (0 <= kx <= 2)
                            row_blocks.append(w2_eq[ky, kx] if ok else zero_cc)
                    col_blocks.append(jnp.concatenate(row_blocks, axis=0))   # (4C, C)
            taps.append(jnp.concatenate(col_blocks, axis=1))                 # (4C, 4C)
    w2p = jnp.stack(taps, axis=0).astype(jnp.bfloat16)                       # (9, 4C, 4C)

    f32 = jnp.float32
    return {
        "w1": w1p,
        "b1": params["conv1_b"].reshape(1, Cout).astype(f32),
        "g1": params["norm1_g"].reshape(1, Cout).astype(f32),
        "bt1": params["norm1_b"].reshape(1, Cout).astype(f32),
        "w2": w2p,
        "b2": params["conv2_b"].reshape(1, Cout).astype(f32),
        "g2": params["norm2_g"].reshape(1, Cout).astype(f32),
        "bt2": params["norm2_b"].reshape(1, Cout).astype(f32),
    }


def _vmem_limit_bytes():
    # ~75% of physical VMEM: 96 MiB on v5e/v6e (128 MiB), 48 MiB on v7x (64 MiB),
    # leaving headroom for the double-buffered input/output blocks.
    try:
        cap = int(pltpu.get_tpu_info().vmem_capacity_bytes)
    except Exception:
        cap = 64 * 1024 * 1024
    return max(32 << 20, min((cap * 3) // 4, 112 << 20))


def upsample_block_forward(x_nchw, packed):
    """UpSampleBlock.forward (stride 2): NCHW in -> NCHW out (bf16)."""
    N, Cin, H, W = x_nchw.shape
    C4 = packed["w2"].shape[2]          # 4 * Cout
    Cout = C4 // 4
    x = jnp.transpose(x_nchw, (0, 2, 3, 1)).astype(jnp.bfloat16)   # NHWC bf16 operands

    out_ph = pl.pallas_call(
        _fused_upsample_kernel,
        out_shape=jax.ShapeDtypeStruct((N, H, W, C4), jnp.bfloat16),   # lane-dense bf16
        grid_spec=pltpu.PrefetchScalarGridSpec(
            num_scalar_prefetch=0,
            grid=(N,),
            in_specs=[
                pl.BlockSpec((1, H, W, Cin), lambda n: (n, 0, 0, 0)),
                pl.BlockSpec((4 * Cin, C4), lambda n: (0, 0)),
                pl.BlockSpec((1, Cout), lambda n: (0, 0)),
                pl.BlockSpec((1, Cout), lambda n: (0, 0)),
                pl.BlockSpec((1, Cout), lambda n: (0, 0)),
                pl.BlockSpec((9, C4, C4), lambda n: (0, 0, 0)),
                pl.BlockSpec((1, Cout), lambda n: (0, 0)),
                pl.BlockSpec((1, Cout), lambda n: (0, 0)),
                pl.BlockSpec((1, Cout), lambda n: (0, 0)),
            ],
            out_specs=pl.BlockSpec((1, H, W, C4), lambda n: (n, 0, 0, 0)),
        ),
        compiler_params=pltpu.CompilerParams(
            dimension_semantics=("parallel",),      # one sample per core
            vmem_limit_bytes=_vmem_limit_bytes(),
        ),
    )(x, packed["w1"], packed["b1"], packed["g1"], packed["bt1"],
      packed["w2"], packed["b2"], packed["g2"], packed["bt2"])

    # de-interleave sub-pixel phases and return NCHW
    out = out_ph.reshape(N, H, W, 2, 2, Cout)
    out = jnp.transpose(out, (0, 5, 1, 3, 2, 4)).reshape(N, Cout, 2 * H, 2 * W)
    return out


# ----------------------------- pure-JAX reference -----------------------------
def _group_norm_ref(y, gamma, beta):
    N, H, W, C = y.shape
    yr = y.reshape(N, H, W, GROUPS, C // GROUPS)
    mean = jnp.mean(yr, axis=(1, 2, 4), keepdims=True)
    var = jnp.var(yr, axis=(1, 2, 4), keepdims=True)
    yn = ((yr - mean) / jnp.sqrt(var + EPS)).reshape(N, H, W, C)
    return yn * gamma + beta


def upsample_block_ref(x_nchw, params, stride):
    x = jnp.transpose(x_nchw, (0, 2, 3, 1)).astype(jnp.float32)
    wt = params["conv1_w"]
    w1_eq = jnp.transpose(wt[:, :, ::-1, ::-1], (2, 3, 0, 1))
    y = jax.lax.conv_general_dilated(
        x, w1_eq, window_strides=(1, 1), padding=((1, 2), (1, 2)),
        lhs_dilation=(stride, stride),
        dimension_numbers=("NHWC", "HWIO", "NHWC")) + params["conv1_b"]
    y = _group_norm_ref(y, params["norm1_g"], params["norm1_b"])
    y = y * jax.nn.sigmoid(y)
    w2_eq = jnp.transpose(params["conv2_w"], (2, 3, 1, 0))
    y = jax.lax.conv_general_dilated(
        y, w2_eq, window_strides=(1, 1), padding=((1, 1), (1, 1)),
        dimension_numbers=("NHWC", "HWIO", "NHWC")) + params["conv2_b"]
    y = _group_norm_ref(y, params["norm2_g"], params["norm2_b"])
    y = y * jax.nn.sigmoid(y)
    return jnp.transpose(y, (0, 3, 1, 2))


if __name__ == "__main__":
    in_ch = out_ch = 32          # GroupNorm(32) needs C % 32 == 0; norm1 needs in == out
    stride = 2
    N, H, W = 2, 8, 8

    key = jax.random.PRNGKey(0)
    ks = jax.random.split(key, 9)
    params = {
        "conv1_w": 0.1 * jax.random.normal(ks[0], (in_ch, out_ch, 3, 3), jnp.float32),
        "conv1_b": 0.1 * jax.random.normal(ks[1], (out_ch,), jnp.float32),
        "norm1_g": 1.0 + 0.1 * jax.random.normal(ks[2], (in_ch,), jnp.float32),
        "norm1_b": 0.1 * jax.random.normal(ks[3], (in_ch,), jnp.float32),
        "conv2_w": 0.1 * jax.random.normal(ks[4], (out_ch, out_ch, 3, 3), jnp.float32),
        "conv2_b": 0.1 * jax.random.normal(ks[5], (out_ch,), jnp.float32),
        "norm2_g": 1.0 + 0.1 * jax.random.normal(ks[6], (out_ch,), jnp.float32),
        "norm2_b": 0.1 * jax.random.normal(ks[7], (out_ch,), jnp.float32),
    }
    x = jax.random.normal(ks[8], (N, in_ch, H, W), jnp.float32)  # NCHW like PyTorch

    packed = pack_params(params, stride)                         # hoisted pre-packing
    out = jax.block_until_ready(upsample_block_forward(x, packed))
    assert out.shape == (N, out_ch, 2 * H, 2 * W), out.shape

    ref = jax.block_until_ready(upsample_block_ref(x, params, stride))
    err = float(jnp.max(jnp.abs(out.astype(jnp.float32) - ref)))
    # bf16 matmul operands + bf16 output (f32 accumulation / GN stats)
    assert err < 5e-2, f"mismatch vs reference: {err}"

    print("KERNEL_OK")
</pallas_src>

<mosaic_0001>
module attributes {stable_mosaic.version = 11 : i64} {
  func.func @_fused_upsample_kernel(%arg0: i32, %arg1: memref<1x8x8x32xbf16, #tpu.memory_space<vmem>>, %arg2: memref<128x128xbf16, #tpu.memory_space<vmem>>, %arg3: memref<1x32xf32, #tpu.memory_space<vmem>>, %arg4: memref<1x32xf32, #tpu.memory_space<vmem>>, %arg5: memref<1x32xf32, #tpu.memory_space<vmem>>, %arg6: memref<9x128x128xbf16, #tpu.memory_space<vmem>>, %arg7: memref<1x32xf32, #tpu.memory_space<vmem>>, %arg8: memref<1x32xf32, #tpu.memory_space<vmem>>, %arg9: memref<1x32xf32, #tpu.memory_space<vmem>>, %arg10: memref<1x8x8x128xbf16, #tpu.memory_space<vmem>>) attributes {dimension_semantics = [#tpu.dimension_semantics<parallel>], iteration_bounds = array<i64: 2>, scalar_prefetch = 0 : i64, scratch_operands = 0 : i64, tpu.core_type = #tpu.core_type<tc>, window_params = [{transform_indices = @transform_0, window_bounds = array<i64: 1, 8, 8, 32>}, {pipeline_mode = #tpu.pipeline_mode<synchronous>, transform_indices = @transform_1, window_bounds = array<i64: 128, 128>}, {pipeline_mode = #tpu.pipeline_mode<synchronous>, transform_indices = @transform_2, window_bounds = array<i64: 1, 32>}, {pipeline_mode = #tpu.pipeline_mode<synchronous>, transform_indices = @transform_3, window_bounds = array<i64: 1, 32>}, {pipeline_mode = #tpu.pipeline_mode<synchronous>, transform_indices = @transform_4, window_bounds = array<i64: 1, 32>}, {pipeline_mode = #tpu.pipeline_mode<synchronous>, transform_indices = @transform_5, window_bounds = array<i64: 9, 128, 128>}, {pipeline_mode = #tpu.pipeline_mode<synchronous>, transform_indices = @transform_6, window_bounds = array<i64: 1, 32>}, {pipeline_mode = #tpu.pipeline_mode<synchronous>, transform_indices = @transform_7, window_bounds = array<i64: 1, 32>}, {pipeline_mode = #tpu.pipeline_mode<synchronous>, transform_indices = @transform_8, window_bounds = array<i64: 1, 32>}, {transform_indices = @transform_9, window_bounds = array<i64: 1, 8, 8, 128>}]} {
    %c0 = arith.constant 0 : index
    %c0_0 = arith.constant 0 : index
    %c0_1 = arith.constant 0 : index
    %c0_2 = arith.constant 0 : index
    %0 = vector.load %arg1[%c0, %c0_0, %c0_1, %c0_2] : memref<1x8x8x32xbf16, #tpu.memory_space<vmem>>, vector<1x8x8x32xbf16>
    %1 = vector.shape_cast %0 : vector<1x8x8x32xbf16> to vector<8x8x32xbf16>
    %cst = arith.constant 0.000000e+00 : bf16
    %2 = vector.broadcast %cst : bf16 to vector<1x8x32xbf16>
    %cst_3 = arith.constant 0.000000e+00 : bf16
    %3 = vector.broadcast %cst_3 : bf16 to vector<8x1x32xbf16>
    %4 = vector.extract_strided_slice %1 {offsets = [1, 0, 0], sizes = [7, 8, 32], strides = [1, 1, 1]} : vector<8x8x32xbf16> to vector<7x8x32xbf16>
    %5 = tpu.concatenate %4, %2 in 0 : vector<7x8x32xbf16>, vector<1x8x32xbf16> -> vector<8x8x32xbf16>
    %6 = vector.extract_strided_slice %1 {offsets = [0, 1, 0], sizes = [8, 7, 32], strides = [1, 1, 1]} : vector<8x8x32xbf16> to vector<8x7x32xbf16>
    %7 = tpu.concatenate %6, %3 in 1 : vector<8x7x32xbf16>, vector<8x1x32xbf16> -> vector<8x8x32xbf16>
    %8 = vector.extract_strided_slice %5 {offsets = [0, 1, 0], sizes = [8, 7, 32], strides = [1, 1, 1]} : vector<8x8x32xbf16> to vector<8x7x32xbf16>
    %9 = tpu.concatenate %8, %3 in 1 : vector<8x7x32xbf16>, vector<8x1x32xbf16> -> vector<8x8x32xbf16>
    %10 = tpu.concatenate %1, %7, %5, %9 in 2 : vector<8x8x32xbf16>, vector<8x8x32xbf16>, vector<8x8x32xbf16>, vector<8x8x32xbf16> -> vector<8x8x128xbf16>
    %11 = vector.shape_cast %10 : vector<8x8x128xbf16> to vector<64x128xbf16>
    %c0_4 = arith.constant 0 : index
    %c0_5 = arith.constant 0 : index
    %12 = vector.load %arg2[%c0_4, %c0_5] : memref<128x128xbf16, #tpu.memory_space<vmem>>, vector<128x128xbf16>
    %cst_6 = arith.constant dense<0.000000e+00> : vector<64x128xf32>
    %13 = tpu.matmul %11, %12, %cst_6 {dimension_numbers = #tpu.dot_dimension_numbers<[1], [0], [0], [1], [0, 0, 1, 1], [], []>} : vector<64x128xbf16>, vector<128x128xbf16>, vector<64x128xf32> -> vector<64x128xf32>
    %c0_7 = arith.constant 0 : index
    %c0_8 = arith.constant 0 : index
    %14 = vector.load %arg3[%c0_7, %c0_8] : memref<1x32xf32, #tpu.memory_space<vmem>>, vector<1x32xf32>
    %15 = tpu.concatenate %14, %14, %14, %14 in 1 : vector<1x32xf32>, vector<1x32xf32>, vector<1x32xf32>, vector<1x32xf32> -> vector<1x128xf32>
    %16 = vector.broadcast %15 : vector<1x128xf32> to vector<64x128xf32>
    %17 = arith.addf %13, %16 : vector<64x128xf32>
    %cst_9 = arith.constant dense<0.000000e+00> : vector<128xf32>
    %18 = vector.multi_reduction <add>, %17, %cst_9 [0] : vector<64x128xf32> to vector<128xf32>
    %19 = vector.shape_cast %18 : vector<128xf32> to vector<1x128xf32>
    %20 = arith.mulf %17, %17 : vector<64x128xf32>
    %cst_10 = arith.constant dense<0.000000e+00> : vector<128xf32>
    %21 = vector.multi_reduction <add>, %20, %cst_10 [0] : vector<64x128xf32> to vector<128xf32>
    %22 = vector.shape_cast %21 : vector<128xf32> to vector<1x128xf32>
    %23 = vector.extract_strided_slice %19 {offsets = [0, 0], sizes = [1, 32], strides = [1, 1]} : vector<1x128xf32> to vector<1x32xf32>
    %24 = vector.extract_strided_slice %19 {offsets = [0, 32], sizes = [1, 32], strides = [1, 1]} : vector<1x128xf32> to vector<1x32xf32>
    %25 = arith.addf %23, %24 : vector<1x32xf32>
    %26 = vector.extract_strided_slice %19 {offsets = [0, 64], sizes = [1, 32], strides = [1, 1]} : vector<1x128xf32> to vector<1x32xf32>
    %27 = arith.addf %25, %26 : vector<1x32xf32>
    %28 = vector.extract_strided_slice %19 {offsets = [0, 96], sizes = [1, 32], strides = [1, 1]} : vector<1x128xf32> to vector<1x32xf32>
    %29 = arith.addf %27, %28 : vector<1x32xf32>
    %30 = vector.extract_strided_slice %22 {offsets = [0, 0], sizes = [1, 32], strides = [1, 1]} : vector<1x128xf32> to vector<1x32xf32>
    %31 = vector.extract_strided_slice %22 {offsets = [0, 32], sizes = [1, 32], strides = [1, 1]} : vector<1x128xf32> to vector<1x32xf32>
    %32 = arith.addf %30, %31 : vector<1x32xf32>
    %33 = vector.extract_strided_slice %22 {offsets = [0, 64], sizes = [1, 32], strides = [1, 1]} : vector<1x128xf32> to vector<1x32xf32>
    %34 = arith.addf %32, %33 : vector<1x32xf32>
    %35 = vector.extract_strided_slice %22 {offsets = [0, 96], sizes = [1, 32], strides = [1, 1]} : vector<1x128xf32> to vector<1x32xf32>
    %36 = arith.addf %34, %35 : vector<1x32xf32>
    %c0_11 = arith.constant 0 : index
    %c0_12 = arith.constant 0 : index
    %37 = vector.load %arg4[%c0_11, %c0_12] : memref<1x32xf32, #tpu.memory_space<vmem>>, vector<1x32xf32>
    %c0_13 = arith.constant 0 : index
    %c0_14 = arith.constant 0 : index
    %38 = vector.load %arg5[%c0_13, %c0_14] : memref<1x32xf32, #tpu.memory_space<vmem>>, vector<1x32xf32>
    %cst_15 = arith.constant 2.560000e+02 : f32
    %39 = vector.broadcast %cst_15 : f32 to vector<1x32xf32>
    %40 = arith.divf %29, %39 : vector<1x32xf32>
    %cst_16 = arith.constant 2.560000e+02 : f32
    %41 = vector.broadcast %cst_16 : f32 to vector<1x32xf32>
    %42 = arith.divf %36, %41 : vector<1x32xf32>
    %43 = arith.mulf %40, %40 : vector<1x32xf32>
    %44 = arith.subf %42, %43 : vector<1x32xf32>
    %cst_17 = arith.constant 0.000000e+00 : f32
    %45 = vector.broadcast %cst_17 : f32 to vector<1x32xf32>
    %46 = arith.maximumf %44, %45 : vector<1x32xf32>
    %cst_18 = arith.constant 9.99999997E-7 : f32
    %47 = vector.broadcast %cst_18 : f32 to vector<1x32xf32>
    %48 = arith.addf %46, %47 : vector<1x32xf32>
    %49 = math.rsqrt %48 : vector<1x32xf32>
    %50 = arith.mulf %37, %49 : vector<1x32xf32>
    %51 = arith.mulf %40, %50 : vector<1x32xf32>
    %52 = arith.subf %38, %51 : vector<1x32xf32>
    %53 = tpu.concatenate %50, %50, %50, %50 in 1 : vector<1x32xf32>, vector<1x32xf32>, vector<1x32xf32>, vector<1x32xf32> -> vector<1x128xf32>
    %54 = vector.broadcast %53 : vector<1x128xf32> to vector<64x128xf32>
    %55 = arith.mulf %17, %54 : vector<64x128xf32>
    %56 = tpu.concatenate %52, %52, %52, %52 in 1 : vector<1x32xf32>, vector<1x32xf32>, vector<1x32xf32>, vector<1x32xf32> -> vector<1x128xf32>
    %57 = vector.broadcast %56 : vector<1x128xf32> to vector<64x128xf32>
    %58 = arith.addf %55, %57 : vector<64x128xf32>
    %59 = arith.negf %58 : vector<64x128xf32>
    %60 = math.exp %59 : vector<64x128xf32>
    %cst_19 = arith.constant 1.000000e+00 : f32
    %61 = vector.broadcast %cst_19 : f32 to vector<64x128xf32>
    %62 = arith.addf %61, %60 : vector<64x128xf32>
    %63 = arith.divf %61, %62 : vector<64x128xf32>
    %64 = arith.mulf %58, %63 : vector<64x128xf32>
    %65 = arith.truncf %64 : vector<64x128xf32> to vector<64x128xbf16>
    %66 = vector.shape_cast %65 : vector<64x128xbf16> to vector<8x8x128xbf16>
    %cst_20 = arith.constant 0.000000e+00 : bf16
    %67 = vector.broadcast %cst_20 : bf16 to vector<1x8x128xbf16>
    %cst_21 = arith.constant 0.000000e+00 : bf16
    %68 = vector.broadcast %cst_21 : bf16 to vector<8x1x128xbf16>
    %69 = vector.extract_strided_slice %66 {offsets = [0, 0, 0], sizes = [7, 8, 128], strides = [1, 1, 1]} : vector<8x8x128xbf16> to vector<7x8x128xbf16>
    %70 = tpu.concatenate %67, %69 in 0 : vector<1x8x128xbf16>, vector<7x8x128xbf16> -> vector<8x8x128xbf16>
    %71 = vector.extract_strided_slice %66 {offsets = [1, 0, 0], sizes = [7, 8, 128], strides = [1, 1, 1]} : vector<8x8x128xbf16> to vector<7x8x128xbf16>
    %72 = tpu.concatenate %71, %67 in 0 : vector<7x8x128xbf16>, vector<1x8x128xbf16> -> vector<8x8x128xbf16>
    %cst_22 = arith.constant 0.000000e+00 : f32
    %73 = vector.broadcast %cst_22 : f32 to vector<64x128xf32>
    %74 = vector.extract_strided_slice %70 {offsets = [0, 0, 0], sizes = [8, 7, 128], strides = [1, 1, 1]} : vector<8x8x128xbf16> to vector<8x7x128xbf16>
    %75 = tpu.concatenate %68, %74 in 1 : vector<8x1x128xbf16>, vector<8x7x128xbf16> -> vector<8x8x128xbf16>
    %76 = vector.shape_cast %75 : vector<8x8x128xbf16> to vector<64x128xbf16>
    %c0_23 = arith.constant 0 : index
    %c0_24 = arith.constant 0 : index
    %c0_25 = arith.constant 0 : index
    %77 = vector.load %arg6[%c0_23, %c0_24, %c0_25] : memref<9x128x128xbf16, #tpu.memory_space<vmem>>, vector<1x128x128xbf16>
    %78 = vector.shape_cast %77 : vector<1x128x128xbf16> to vector<128x128xbf16>
    %cst_26 = arith.constant dense<0.000000e+00> : vector<64x128xf32>
    %79 = tpu.matmul %76, %78, %cst_26 {dimension_numbers = #tpu.dot_dimension_numbers<[1], [0], [0], [1], [0, 0, 1, 1], [], []>} : vector<64x128xbf16>, vector<128x128xbf16>, vector<64x128xf32> -> vector<64x128xf32>
    %80 = arith.addf %73, %79 : vector<64x128xf32>
    %81 = vector.shape_cast %70 : vector<8x8x128xbf16> to vector<64x128xbf16>
    %c1 = arith.constant 1 : index
    %c0_27 = arith.constant 0 : index
    %c0_28 = arith.constant 0 : index
    %82 = vector.load %arg6[%c1, %c0_27, %c0_28] : memref<9x128x128xbf16, #tpu.memory_space<vmem>>, vector<1x128x128xbf16>
    %83 = vector.shape_cast %82 : vector<1x128x128xbf16> to vector<128x128xbf16>
    %cst_29 = arith.constant dense<0.000000e+00> : vector<64x128xf32>
    %84 = tpu.matmul %81, %83, %cst_29 {dimension_numbers = #tpu.dot_dimension_numbers<[1], [0], [0], [1], [0, 0, 1, 1], [], []>} : vector<64x128xbf16>, vector<128x128xbf16>, vector<64x128xf32> -> vector<64x128xf32>
    %85 = arith.addf %80, %84 : vector<64x128xf32>
    %86 = vector.extract_strided_slice %70 {offsets = [0, 1, 0], sizes = [8, 7, 128], strides = [1, 1, 1]} : vector<8x8x128xbf16> to vector<8x7x128xbf16>
    %87 = tpu.concatenate %86, %68 in 1 : vector<8x7x128xbf16>, vector<8x1x128xbf16> -> vector<8x8x128xbf16>
    %88 = vector.shape_cast %87 : vector<8x8x128xbf16> to vector<64x128xbf16>
    %c2 = arith.constant 2 : index
    %c0_30 = arith.constant 0 : index
    %c0_31 = arith.constant 0 : index
    %89 = vector.load %arg6[%c2, %c0_30, %c0_31] : memref<9x128x128xbf16, #tpu.memory_space<vmem>>, vector<1x128x128xbf16>
    %90 = vector.shape_cast %89 : vector<1x128x128xbf16> to vector<128x128xbf16>
    %cst_32 = arith.constant dense<0.000000e+00> : vector<64x128xf32>
    %91 = tpu.matmul %88, %90, %cst_32 {dimension_numbers = #tpu.dot_dimension_numbers<[1], [0], [0], [1], [0, 0, 1, 1], [], []>} : vector<64x128xbf16>, vector<128x128xbf16>, vector<64x128xf32> -> vector<64x128xf32>
    %92 = arith.addf %85, %91 : vector<64x128xf32>
    %93 = vector.extract_strided_slice %66 {offsets = [0, 0, 0], sizes = [8, 7, 128], strides = [1, 1, 1]} : vector<8x8x128xbf16> to vector<8x7x128xbf16>
    %94 = tpu.concatenate %68, %93 in 1 : vector<8x1x128xbf16>, vector<8x7x128xbf16> -> vector<8x8x128xbf16>
    %95 = vector.shape_cast %94 : vector<8x8x128xbf16> to vector<64x128xbf16>
    %c3 = arith.constant 3 : index
    %c0_33 = arith.constant 0 : index
    %c0_34 = arith.constant 0 : index
    %96 = vector.load %arg6[%c3, %c0_33, %c0_34] : memref<9x128x128xbf16, #tpu.memory_space<vmem>>, vector<1x128x128xbf16>
    %97 = vector.shape_cast %96 : vector<1x128x128xbf16> to vector<128x128xbf16>
    %cst_35 = arith.constant dense<0.000000e+00> : vector<64x128xf32>
    %98 = tpu.matmul %95, %97, %cst_35 {dimension_numbers = #tpu.dot_dimension_numbers<[1], [0], [0], [1], [0, 0, 1, 1], [], []>} : vector<64x128xbf16>, vector<128x128xbf16>, vector<64x128xf32> -> vector<64x128xf32>
    %99 = arith.addf %92, %98 : vector<64x128xf32>
    %100 = vector.shape_cast %66 : vector<8x8x128xbf16> to vector<64x128xbf16>
    %c4 = arith.constant 4 : index
    %c0_36 = arith.constant 0 : index
    %c0_37 = arith.constant 0 : index
    %101 = vector.load %arg6[%c4, %c0_36, %c0_37] : memref<9x128x128xbf16, #tpu.memory_space<vmem>>, vector<1x128x128xbf16>
    %102 = vector.shape_cast %101 : vector<1x128x128xbf16> to vector<128x128xbf16>
    %cst_38 = arith.constant dense<0.000000e+00> : vector<64x128xf32>
    %103 = tpu.matmul %100, %102, %cst_38 {dimension_numbers = #tpu.dot_dimension_numbers<[1], [0], [0], [1], [0, 0, 1, 1], [], []>} : vector<64x128xbf16>, vector<128x128xbf16>, vector<64x128xf32> -> vector<64x128xf32>
    %104 = arith.addf %99, %103 : vector<64x128xf32>
    %105 = vector.extract_strided_slice %66 {offsets = [0, 1, 0], sizes = [8, 7, 128], strides = [1, 1, 1]} : vector<8x8x128xbf16> to vector<8x7x128xbf16>
    %106 = tpu.concatenate %105, %68 in 1 : vector<8x7x128xbf16>, vector<8x1x128xbf16> -> vector<8x8x128xbf16>
    %107 = vector.shape_cast %106 : vector<8x8x128xbf16> to vector<64x128xbf16>
    %c5 = arith.constant 5 : index
    %c0_39 = arith.constant 0 : index
    %c0_40 = arith.constant 0 : index
    %108 = vector.load %arg6[%c5, %c0_39, %c0_40] : memref<9x128x128xbf16, #tpu.memory_space<vmem>>, vector<1x128x128xbf16>
    %109 = vector.shape_cast %108 : vector<1x128x128xbf16> to vector<128x128xbf16>
    %cst_41 = arith.constant dense<0.000000e+00> : vector<64x128xf32>
    %110 = tpu.matmul %107, %109, %cst_41 {dimension_numbers = #tpu.dot_dimension_numbers<[1], [0], [0], [1], [0, 0, 1, 1], [], []>} : vector<64x128xbf16>, vector<128x128xbf16>, vector<64x128xf32> -> vector<64x128xf32>
    %111 = arith.addf %104, %110 : vector<64x128xf32>
    %112 = vector.extract_strided_slice %72 {offsets = [0, 0, 0], sizes = [8, 7, 128], strides = [1, 1, 1]} : vector<8x8x128xbf16> to vector<8x7x128xbf16>
    %113 = tpu.concatenate %68, %112 in 1 : vector<8x1x128xbf16>, vector<8x7x128xbf16> -> vector<8x8x128xbf16>
    %114 = vector.shape_cast %113 : vector<8x8x128xbf16> to vector<64x128xbf16>
    %c6 = arith.constant 6 : index
    %c0_42 = arith.constant 0 : index
    %c0_43 = arith.constant 0 : index
    %115 = vector.load %arg6[%c6, %c0_42, %c0_43] : memref<9x128x128xbf16, #tpu.memory_space<vmem>>, vector<1x128x128xbf16>
    %116 = vector.shape_cast %115 : vector<1x128x128xbf16> to vector<128x128xbf16>
    %cst_44 = arith.constant dense<0.000000e+00> : vector<64x128xf32>
    %117 = tpu.matmul %114, %116, %cst_44 {dimension_numbers = #tpu.dot_dimension_numbers<[1], [0], [0], [1], [0, 0, 1, 1], [], []>} : vector<64x128xbf16>, vector<128x128xbf16>, vector<64x128xf32> -> vector<64x128xf32>
    %118 = arith.addf %111, %117 : vector<64x128xf32>
    %119 = vector.shape_cast %72 : vector<8x8x128xbf16> to vector<64x128xbf16>
    %c7 = arith.constant 7 : index
    %c0_45 = arith.constant 0 : index
    %c0_46 = arith.constant 0 : index
    %120 = vector.load %arg6[%c7, %c0_45, %c0_46] : memref<9x128x128xbf16, #tpu.memory_space<vmem>>, vector<1x128x128xbf16>
    %121 = vector.shape_cast %120 : vector<1x128x128xbf16> to vector<128x128xbf16>
    %cst_47 = arith.constant dense<0.000000e+00> : vector<64x128xf32>
    %122 = tpu.matmul %119, %121, %cst_47 {dimension_numbers = #tpu.dot_dimension_numbers<[1], [0], [0], [1], [0, 0, 1, 1], [], []>} : vector<64x128xbf16>, vector<128x128xbf16>, vector<64x128xf32> -> vector<64x128xf32>
    %123 = arith.addf %118, %122 : vector<64x128xf32>
    %124 = vector.extract_strided_slice %72 {offsets = [0, 1, 0], sizes = [8, 7, 128], strides = [1, 1, 1]} : vector<8x8x128xbf16> to vector<8x7x128xbf16>
    %125 = tpu.concatenate %124, %68 in 1 : vector<8x7x128xbf16>, vector<8x1x128xbf16> -> vector<8x8x128xbf16>
    %126 = vector.shape_cast %125 : vector<8x8x128xbf16> to vector<64x128xbf16>
    %c8 = arith.constant 8 : index
    %c0_48 = arith.constant 0 : index
    %c0_49 = arith.constant 0 : index
    %127 = vector.load %arg6[%c8, %c0_48, %c0_49] : memref<9x128x128xbf16, #tpu.memory_space<vmem>>, vector<1x128x128xbf16>
    %128 = vector.shape_cast %127 : vector<1x128x128xbf16> to vector<128x128xbf16>
    %cst_50 = arith.constant dense<0.000000e+00> : vector<64x128xf32>
    %129 = tpu.matmul %126, %128, %cst_50 {dimension_numbers = #tpu.dot_dimension_numbers<[1], [0], [0], [1], [0, 0, 1, 1], [], []>} : vector<64x128xbf16>, vector<128x128xbf16>, vector<64x128xf32> -> vector<64x128xf32>
    %130 = arith.addf %123, %129 : vector<64x128xf32>
    %c0_51 = arith.constant 0 : index
    %c0_52 = arith.constant 0 : index
    %131 = vector.load %arg7[%c0_51, %c0_52] : memref<1x32xf32, #tpu.memory_space<vmem>>, vector<1x32xf32>
    %132 = tpu.concatenate %131, %131, %131, %131 in 1 : vector<1x32xf32>, vector<1x32xf32>, vector<1x32xf32>, vector<1x32xf32> -> vector<1x128xf32>
    %133 = vector.broadcast %132 : vector<1x128xf32> to vector<64x128xf32>
    %134 = arith.addf %130, %133 : vector<64x128xf32>
    %cst_53 = arith.constant dense<0.000000e+00> : vector<128xf32>
    %135 = vector.multi_reduction <add>, %134, %cst_53 [0] : vector<64x128xf32> to vector<128xf32>
    %136 = vector.shape_cast %135 : vector<128xf32> to vector<1x128xf32>
    %137 = arith.mulf %134, %134 : vector<64x128xf32>
    %cst_54 = arith.constant dense<0.000000e+00> : vector<128xf32>
    %138 = vector.multi_reduction <add>, %137, %cst_54 [0] : vector<64x128xf32> to vector<128xf32>
    %139 = vector.shape_cast %138 : vector<128xf32> to vector<1x128xf32>
    %140 = vector.extract_strided_slice %136 {offsets = [0, 0], sizes = [1, 32], strides = [1, 1]} : vector<1x128xf32> to vector<1x32xf32>
    %141 = vector.extract_strided_slice %136 {offsets = [0, 32], sizes = [1, 32], strides = [1, 1]} : vector<1x128xf32> to vector<1x32xf32>
    %142 = arith.addf %140, %141 : vector<1x32xf32>
    %143 = vector.extract_strided_slice %136 {offsets = [0, 64], sizes = [1, 32], strides = [1, 1]} : vector<1x128xf32> to vector<1x32xf32>
    %144 = arith.addf %142, %143 : vector<1x32xf32>
    %145 = vector.extract_strided_slice %136 {offsets = [0, 96], sizes = [1, 32], strides = [1, 1]} : vector<1x128xf32> to vector<1x32xf32>
    %146 = arith.addf %144, %145 : vector<1x32xf32>
    %147 = vector.extract_strided_slice %139 {offsets = [0, 0], sizes = [1, 32], strides = [1, 1]} : vector<1x128xf32> to vector<1x32xf32>
    %148 = vector.extract_strided_slice %139 {offsets = [0, 32], sizes = [1, 32], strides = [1, 1]} : vector<1x128xf32> to vector<1x32xf32>
    %149 = arith.addf %147, %148 : vector<1x32xf32>
    %150 = vector.extract_strided_slice %139 {offsets = [0, 64], sizes = [1, 32], strides = [1, 1]} : vector<1x128xf32> to vector<1x32xf32>
    %151 = arith.addf %149, %150 : vector<1x32xf32>
    %152 = vector.extract_strided_slice %139 {offsets = [0, 96], sizes = [1, 32], strides = [1, 1]} : vector<1x128xf32> to vector<1x32xf32>
    %153 = arith.addf %151, %152 : vector<1x32xf32>
    %c0_55 = arith.constant 0 : index
    %c0_56 = arith.constant 0 : index
    %154 = vector.load %arg8[%c0_55, %c0_56] : memref<1x32xf32, #tpu.memory_space<vmem>>, vector<1x32xf32>
    %c0_57 = arith.constant 0 : index
    %c0_58 = arith.constant 0 : index
    %155 = vector.load %arg9[%c0_57, %c0_58] : memref<1x32xf32, #tpu.memory_space<vmem>>, vector<1x32xf32>
    %cst_59 = arith.constant 2.560000e+02 : f32
    %156 = vector.broadcast %cst_59 : f32 to vector<1x32xf32>
    %157 = arith.divf %146, %156 : vector<1x32xf32>
    %cst_60 = arith.constant 2.560000e+02 : f32
    %158 = vector.broadcast %cst_60 : f32 to vector<1x32xf32>
    %159 = arith.divf %153, %158 : vector<1x32xf32>
    %160 = arith.mulf %157, %157 : vector<1x32xf32>
    %161 = arith.subf %159, %160 : vector<1x32xf32>
    %cst_61 = arith.constant 0.000000e+00 : f32
    %162 = vector.broadcast %cst_61 : f32 to vector<1x32xf32>
    %163 = arith.maximumf %161, %162 : vector<1x32xf32>
    %cst_62 = arith.constant 9.99999997E-7 : f32
    %164 = vector.broadcast %cst_62 : f32 to vector<1x32xf32>
    %165 = arith.addf %163, %164 : vector<1x32xf32>
    %166 = math.rsqrt %165 : vector<1x32xf32>
    %167 = arith.mulf %154, %166 : vector<1x32xf32>
    %168 = arith.mulf %157, %167 : vector<1x32xf32>
    %169 = arith.subf %155, %168 : vector<1x32xf32>
    %170 = tpu.concatenate %167, %167, %167, %167 in 1 : vector<1x32xf32>, vector<1x32xf32>, vector<1x32xf32>, vector<1x32xf32> -> vector<1x128xf32>
    %171 = vector.broadcast %170 : vector<1x128xf32> to vector<64x128xf32>
    %172 = arith.mulf %134, %171 : vector<64x128xf32>
    %173 = tpu.concatenate %169, %169, %169, %169 in 1 : vector<1x32xf32>, vector<1x32xf32>, vector<1x32xf32>, vector<1x32xf32> -> vector<1x128xf32>
    %174 = vector.broadcast %173 : vector<1x128xf32> to vector<64x128xf32>
    %175 = arith.addf %172, %174 : vector<64x128xf32>
    %176 = arith.negf %175 : vector<64x128xf32>
    %177 = math.exp %176 : vector<64x128xf32>
    %cst_63 = arith.constant 1.000000e+00 : f32
    %178 = vector.broadcast %cst_63 : f32 to vector<64x128xf32>
    %179 = arith.addf %178, %177 : vector<64x128xf32>
    %180 = arith.divf %178, %179 : vector<64x128xf32>
    %181 = arith.mulf %175, %180 : vector<64x128xf32>
    %182 = vector.shape_cast %181 : vector<64x128xf32> to vector<8x8x128xf32>
    %183 = arith.truncf %182 : vector<8x8x128xf32> to vector<8x8x128xbf16>
    %c0_64 = arith.constant 0 : index
    %c0_65 = arith.constant 0 : index
    %c0_66 = arith.constant 0 : index
    %c0_67 = arith.constant 0 : index
    %184 = vector.load %arg10[%c0_64, %c0_65, %c0_66, %c0_67] : memref<1x8x8x128xbf16, #tpu.memory_space<vmem>>, vector<1x8x8x128xbf16>
    %185 = vector.shape_cast %184 : vector<1x8x8x128xbf16> to vector<8x8x128xbf16>
    %186 = vector.shape_cast %183 : vector<8x8x128xbf16> to vector<1x8x8x128xbf16>
    tpu.vector_store %arg10[%c0_64, %c0_65, %c0_66, %c0_67], %186 {strides = array<i32>} : memref<1x8x8x128xbf16, #tpu.memory_space<vmem>>, vector<1x8x8x128xbf16>,
    return
  }
  func.func @transform_0(%arg0: i32) -> (i32, i32, i32, i32) {
    %c0_i32 = arith.constant 0 : i32
    %c0_i32_0 = arith.constant 0 : i32
    %c0_i32_1 = arith.constant 0 : i32
    %c0_i32_2 = arith.constant 0 : i32
    return %arg0, %c0_i32, %c0_i32_0, %c0_i32_1 : i32, i32, i32, i32
  }
  func.func @transform_1(%arg0: i32) -> (i32, i32) {
    %c0_i32 = arith.constant 0 : i32
    %c0_i32_0 = arith.constant 0 : i32
    %c0_i32_1 = arith.constant 0 : i32
    return %c0_i32, %c0_i32_0 : i32, i32
  }
  func.func @transform_2(%arg0: i32) -> (i32, i32) {
    %c0_i32 = arith.constant 0 : i32
    %c0_i32_0 = arith.constant 0 : i32
    %c0_i32_1 = arith.constant 0 : i32
    return %c0_i32, %c0_i32_0 : i32, i32
  }
  func.func @transform_3(%arg0: i32) -> (i32, i32) {
    %c0_i32 = arith.constant 0 : i32
    %c0_i32_0 = arith.constant 0 : i32
    %c0_i32_1 = arith.constant 0 : i32
    return %c0_i32, %c0_i32_0 : i32, i32
  }
  func.func @transform_4(%arg0: i32) -> (i32, i32) {
    %c0_i32 = arith.constant 0 : i32
    %c0_i32_0 = arith.constant 0 : i32
    %c0_i32_1 = arith.constant 0 : i32
    return %c0_i32, %c0_i32_0 : i32, i32
  }
  func.func @transform_5(%arg0: i32) -> (i32, i32, i32) {
    %c0_i32 = arith.constant 0 : i32
    %c0_i32_0 = arith.constant 0 : i32
    %c0_i32_1 = arith.constant 0 : i32
    %c0_i32_2 = arith.constant 0 : i32
    return %c0_i32, %c0_i32_0, %c0_i32_1 : i32, i32, i32
  }
  func.func @transform_6(%arg0: i32) -> (i32, i32) {
    %c0_i32 = arith.constant 0 : i32
    %c0_i32_0 = arith.constant 0 : i32
    %c0_i32_1 = arith.constant 0 : i32
    return %c0_i32, %c0_i32_0 : i32, i32
  }
  func.func @transform_7(%arg0: i32) -> (i32, i32) {
    %c0_i32 = arith.constant 0 : i32
    %c0_i32_0 = arith.constant 0 : i32
    %c0_i32_1 = arith.constant 0 : i32
    return %c0_i32, %c0_i32_0 : i32, i32
  }
  func.func @transform_8(%arg0: i32) -> (i32, i32) {
    %c0_i32 = arith.constant 0 : i32
    %c0_i32_0 = arith.constant 0 : i32
    %c0_i32_1 = arith.constant 0 : i32
    return %c0_i32, %c0_i32_0 : i32, i32
  }
  func.func @transform_9(%arg0: i32) -> (i32, i32, i32, i32) {
    %c0_i32 = arith.constant 0 : i32
    %c0_i32_0 = arith.constant 0 : i32
    %c0_i32_1 = arith.constant 0 : i32
    %c0_i32_2 = arith.constant 0 : i32
    return %arg0, %c0_i32, %c0_i32_0, %c0_i32_1 : i32, i32, i32, i32
  }
}

</mosaic_0001>

<bundles_post_ra>
// kernel: tpu_custom_call.1
= control target key start
LH: loop header
LB: loop body
LE: loop exit
PB: predicated region body
PF: predicated region fallthrough
CT: control target
= control target key end

     0   :  { %s4864_s0 = inlined_call_operand.hbm [shape: bf16[2,8,8,32], index: 0, kind: input, shape index: {}]   ;;  %s4865_s1 = inlined_call_operand.hbm [shape: bf16[128,128], index: 1, kind: input, shape index: {}]   ;;  %s4866_s2 = inlined_call_operand.vmem [shape: f32[1,32], index: 2, kind: input, shape index: {}]   ;;  %s4867_s3 = inlined_call_operand.vmem [shape: f32[1,32], index: 3, kind: input, shape index: {}]   ;;  %s4868_s4 = inlined_call_operand.vmem [shape: f32[1,32], index: 4, kind: input, shape index: {}]   ;;  %s4869_s5 = inlined_call_operand.hbm [shape: bf16[9,128,128], index: 5, kind: input, shape index: {}]   ;;  %s4870_s6 = inlined_call_operand.vmem [shape: f32[1,32], index: 6, kind: input, shape index: {}]   ;;  %s4871_s7 = inlined_call_operand.vmem [shape: f32[1,32], index: 7, kind: input, shape index: {}]   ;;  %s4872_s8 = inlined_call_operand.vmem [shape: f32[1,32], index: 8, kind: input, shape index: {}]   ;;  %s4873_s9 = inlined_call_operand.hbm [shape: bf16[2,8,8,128], index: 9, kind: output, shape index: {}]  }
   0x1   :  { %4892 = sst [smem:[#allocation13_spill]] %s4865_s1 }
   0x2   :  { %4893 = sst [smem:[#allocation14_spill]] %s4869_s5 }
   0x3   :  { %14 = vsyncpa [#allocation3], 0 }
   0x4   :  { %16 = vsyncpa [#allocation3 + $0x1], 0 }
   0x5   :  { %17 = vsyncpa [#allocation6], 0 }
   0x6   :  { %18 = vsyncpa [#allocation4], 0 }
   0x7   :  { %20 = vsyncpa [#allocation4 + $0x1], 0  ;;  %s3609_s30 = smov 0   ;;  %s3611_s10 = smov 0  }
   0x8   :  { %s3613_s11 = smov 0   ;;  %s3615_s12 = smov 0  }
   0x9 LB: > { %s3630_s13 = sadd.s32 4294967295, %s3547_s12   ;;  %s2765_s14 = sadd.s32 4294967294, %s3547_s12   ;;  %s3547_s12 = sphi %s3615_s12, %s4967_s12   ;;  %s3543_s11 = sphi %s3613_s11, %s4966_s11   ;;  %s3539_s10 = sphi %s3611_s10, %s4965_s10   ;;  %s3535_s30 = sphi %s3609_s30, %s4964_s30  }
   0xa   : > { %p46_p0 = scmp.ne.s32.totalorder %s3539_s10, %s3535_s30  ;;  %p47_p1 = scmp.eq.s32.totalorder %s3630_s13, 0 }
   0xb   : > { %p238_p2 = scmp.eq.s32.totalorder %s3630_s13, 1  ;;  %p244_p3 = scmp.eq.s32.totalorder %s2765_s14, 1 }
   0xc   : > { %p3639_p4 = por %p47_p1, %p46_p0  ;;  %p2766_p5 = scmp.ge.s32.totalorder %s3547_s12, 1 }
   0xd   : > { %p3644_p6 = por %p244_p3, %p46_p0  ;;  %p251_p7 = scmp.lt.s32.totalorder %s3547_s12, 3 }
   0xe   : > { %s4896_s1 = sld [smem:[#allocation13_spill]]  ;;  %s3549_s21 = smov [#allocation5]  }
   0xf   : > { %p3652_p8 = pnand %p2766_p5, %p251_p7  ;;  %s264_s22 = sshll.u32 %s3549_s21, 4  ;;  %s265_s22 = int_to_ptr.vmem [resolvable:$true] %s264_s22 }
  0x10   : > { %s4898_s5 = sld [smem:[#allocation14_spill]]  ;;  %s4874_s26 = smov 64  }
  0x11   : > { %p3252_p9 = pneg %p3652_p8  ;;  %s4875_s27 = smov 4  }
  0x12   : > { %s3552_s28 = smov [#allocation7]   ;;  %s3671_s14 = sadd.s32 1, %s3547_s12  }
  0x13   : > { %p3253_p10 = pnand %p3252_p9, %p47_p1  ;;  %s287_s29 = sshll.u32 %s3552_s28, 4  ;;  %s288_s29 = int_to_ptr.vmem [resolvable:$true] %s287_s29 }
  0x14   : > { %s262_s19 = sshll.u32 %s4896_s1, 4  ;;  %s33_s17 = sadd.s32 1, %s3543_s11  ;;  %s263_s19 = int_to_ptr.hbm [resolvable:$true] %s262_s19 }
  0x15   : > { %3255 = dma.hbm_to_vmem [thread:$0]  (!%p3253_p10), %s263_s19, 1024, %s265_s22, [#allocation6], %s4874_s26, %s4874_s26, %s4875_s27  }
  0x16   : > { %s285_s25 = sshll.u32 %s4898_s5, 4  ;;  %s30_s18 = ssub.s32 %s3547_s12, %s3671_s14  ;;  %s286_s25 = int_to_ptr.hbm [resolvable:$true] %s285_s25 }
  0x17   : > { %3258 = dma.hbm_to_vmem [thread:$0]  (!%p3253_p10), %s286_s25, 9216, %s288_s29, [#allocation6], %s4874_s26, %s4874_s26, %s4875_s27  }
  0x18   : > { %p40_p12 = scmp.ne.s32.totalorder %s3543_s11, %s3539_s10  ;;  %p31_p13 = scmp.eq.s32.totalorder %s30_s18, 0 }
  0x19   : > { %p41_p0 = scmp.eq.s32.totalorder %s3547_s12, 0  ;;  %p3269_p5 = scmp.lt.s32.totalorder %s3547_s12, 2 }
  0x1a   : > { %p3681_p3 = por %p238_p2, %p40_p12  ;;  %s310_s22 = sand.u32 1, %s3543_s11  }
  0x1b   : > { %s3687_s19 = scalar_select %p31_p13, %s3543_s11, %s33_s17  }
  0x1c   : > { %p42_p7 = por %p41_p0, %p40_p12  ;;  %s2770_s23 = sshll.u32 %s310_s22, 5 }
  0x1d   : > { %4900 = sst [smem:[#allocation12_spill]] %s3687_s19  ;;  %s3119_s24 = sshll.u32 %s3547_s12, 5 }
  0x1e   : > { %s319_s29 = scalar_lea.hbm %s4864_s0, %s3119_s24  ;;  %s314_s26 = scalar_lea.vmem [#allocation2], %s2770_s23 }
  0x1f   : > { %s322_s27 = sshll.u32 %s314_s26, 4  ;;  %s320_s18 = sshll.u32 %s319_s29, 4  ;;  %s323_s27 = int_to_ptr.vmem [resolvable:$true] %s322_s27  ;;  %s321_s18 = int_to_ptr.hbm [resolvable:$true] %s320_s18 }
  0x20   : > { %p3694_p2 = pnand %p3269_p5, %p42_p7  ;;  %s311_s17 = scalar_lea.sflag [#allocation3], %s310_s22 }
  0x21   : > { %s3447_s5 = sshra.s32 %s321_s18, 4  ;;  %s3454_s26 = scalar_lea.hbm %s4864_s0, 64  ;;  %s3448_s5 = int_to_ptr.hbm [resolvable:$true] %s3447_s5 }
  0x22   : > { %s3449_s19 = scalar_lea.hbm %s3448_s5, 32  ;;  %p3451_p10 = pneg %p3694_p2 }
  0x23   : > { %p3450_p9 = scmp.ne.s32.totalorder %s3448_s5, %s3449_s19  ;;  %p3455_p0 = scmp.lt.s32.totalorder %s3448_s5, %s4864_s0 }
  0x24   : > { %p3456_p5 = scmp.lt.s32.totalorder %s3454_s26, %s3449_s19 }
  0x25   : > { %p3452_p12 = pnand %p3451_p10, %p3450_p9 }
  0x26   : > { %p3457_p7 = por %p3456_p5, %p3455_p0 }
  0x27   : > { %p3453_p13 = pneg %p3452_p12 }
  0x29   : > { %p3458_p11 = pnand %p3457_p7, %p3453_p13 }
  0x2b   : > { %3461 = shalt.err (!%p3458_p11)
}
  0x2c   : > { %s4902_s22 = smov 4   ;;  %s4903_s29 = smov 64  }
  0x2d   : > { %3262 = dma.hbm_to_vmem [thread:$0]  (!%p3694_p2), %s321_s18, 512, %s323_s27, %s311_s17, %s4903_s29, %s4903_s29, %s4902_s22  }
  0x2e   : > { %334 = sbr.rel (%p3652_p8) target bundleno = 1374 (0x55e), region = 56  ;;  %s3714_s24 = sand.u32 (!%p3652_p8), 1, %s3539_s10  }
  0x2f   : > { %s2774_s5 = sshll.u32 (!%p3652_p8), %s3714_s24, 5  ;;  %s337_s19 = scalar_lea.sflag (!%p3652_p8), [#allocation3], %s3714_s24 }
  0x30   : > { %s3720_s23 = scalar_lea.vmem (!%p3652_p8), [#allocation2], %s2774_s5 }
  0x33   : > { %3522 = dma.done.wait (%p3639_p4), %s337_s19, 512  }
  0x34   : > { %3524 = vsyncadd (%p3639_p4), %s337_s19, 4294966784 }
  0x35   : > { %3526 = dma.done.wait (%p47_p1), [#allocation6], 10240  }
  0x36   : > { %3528 = vsyncadd (%p47_p1), [#allocation6], 4294957056  ;;  %v3731_v0 = vld [vmem:[%s3720_s23 + $0x4] sm:$0xf]  ;;  %v3734_v1 = vld [vmem:[%s3720_s23] sm:$0xf] }
  0x37   : > { %v3737_v2 = vld [vmem:[%s3720_s23 + $0x8] sm:$0xf]  ;;  %v404_v3 = vunpack.c.l.b16 %v3731_v0  ;;  %v403_v4 = vunpack.c.l.b16 %v3734_v1  ;;  %v3743_v6 = vld [vmem:[%s3720_s23 + $0x14] sm:$0xf]  ;;  %v3746_v7 = vld [vmem:[%s3720_s23 + $0x10] sm:$0xf] }
  0x38   : > { %v405_v5 = vunpack.c.l.b16 %v3737_v2  ;;  %v408_v8 = vunpack.c.l.b16 %v3743_v6  ;;  %v407_v9 = vunpack.c.l.b16 %v3746_v7  ;;  %vm483_vm0 = vcmask 1043456   ;;  %s3553_s1 = smov 64   ;;  %v3761_v24 = vld [vmem:[%s3720_s23 + $0x18] sm:$0xf]  ;;  %v3767_v34 = vld [vmem:[%s3720_s23 + $0xc] sm:$0xf] }
  0x39   : > { %v412_v10 = vpack.c.b16 %v404_v3, %v404_v3  ;;  %v411_v11 = vpack.c.b16 %v403_v4, %v403_v4  ;;  %vm484_vm1 = vsmask.f32 3328  ;;  %v409_v33 = vunpack.c.l.b16 %v3761_v24  ;;  %s3554_s15 = smov 32   ;;  %s3555_s20 = smov 96   ;;  %v3785_v51 = vld [vmem:[%s3720_s23 + $0x1c] sm:$0xf] }
  0x3a   : > { %v413_v12 = vpack.c.b16 %v405_v5, %v405_v5  ;;  %v416_v13 = vpack.c.b16 %v408_v8, %v408_v8  ;;  %v3750_v14 = vpack.c.b16 %v407_v9, %v407_v9  ;;  %vm3756_vm2 = vmand %vm483_vm0, %vm484_vm1  ;;  %v406_v40 = vunpack.c.l.b16 %v3767_v34  ;;  %v3127_v61 = vld [vmem:[#allocation5 + $0x38] sm:$0xff]  ;;  %s2658_s23 = scalar_lea.sflag [#allocation4], %s3714_s24  ;;  %s3497_s25 = scalar_lea.hbm %s4873_s9, 64 }
  0x3b   : > { %530 = vrot.lane.b32.xlu1 %v412_v10, %s3553_s1  ;;  %v420_v15 = vshrl.u32 %v411_v11, 16  ;;  %v422_v16 = vshll.u32 %v411_v11, 16  ;;  %v429_v17 = vshll.u32 %v412_v10, 16  ;;  %v427_v23 = vshrl.u32 %v412_v10, 16  ;;  %726 = vmatpush.bf16.msra.mxu0 %v3127_v61 }
  0x3c   : > { %v436_v18 = vshll.u32 %v413_v12, 16  ;;  %538 = vrot.lane.b32.xlu2 %v416_v13, %s3553_s1  ;;  %v448_v20 = vshrl.u32 %v3750_v14, 16  ;;  %v450_v21 = vshll.u32 %v3750_v14, 16  ;;  %v457_v27 = vshll.u32 %v416_v13, 16  ;;  %3224 = vmatpush.bf16.msra.mxu2 %v3127_v61 }
  0x3d   : > { %v424_v19 = vrot.slane %v422_v16, 1  ;;  %v431_v26 = vrot.slane %v429_v17, 1  ;;  %v434_v29 = vshrl.u32 %v413_v12, 16  ;;  %v455_v36 = vshrl.u32 %v416_v13, 16  ;;  %v3125_v16 = vld [vmem:[#allocation5 + $0x28] sm:$0xff]  ;;  %v3124_v17 = vld [vmem:[#allocation5 + $0x20] sm:$0xff] }
  0x3e   : > { %v452_v28 = vrot.slane %v450_v21, 1  ;;  %v438_v30 = vrot.slane %v436_v18, 1  ;;  %v459_v37 = vrot.slane %v457_v27, 1  ;;  %v417_v41 = vpack.c.b16 %v409_v33, %v409_v33  ;;  %v3123_v18 = vld [vmem:[#allocation5 + $0x18] sm:$0xff]  ;;  %v3120_v21 = vld [vmem:[#allocation5] sm:$0xff] }
  0x3f   : > { %v425_v25 = vor.u32 %v424_v19, %v420_v15  ;;  %v432_v35 = vor.u32 %v431_v26, %v427_v23  ;;  %v414_v46 = vpack.c.b16 %v406_v40, %v406_v40  ;;  %v410_v53 = vunpack.c.l.b16 %v3785_v51  ;;  %v3122_v19 = vld [vmem:[#allocation5 + $0x10] sm:$0xff]  ;;  %v3315_v26 = vld [vmem:[%s4866_s2] ss:$0 sm:$0xff] }
  0x40   : > { %v453_v32 = vor.u32 %v452_v28, %v448_v20  ;;  %v439_v39 = vor.u32 %v438_v30, %v434_v29  ;;  %v460_v43 = vor.u32 %v459_v37, %v455_v36  ;;  %v464_v44 = vshll.u32 %v417_v41, 16  ;;  %v3121_v20 = vld [vmem:[#allocation5 + $0x8] sm:$0xff] }
  0x41   : > { %v486_v31 = vsel %vm3756_vm2, %v425_v25, 0  ;;  %v487_v42 = vsel %vm3756_vm2, %v432_v35, 0  ;;  %v462_v48 = vshrl.u32 %v417_v41, 16  ;;  %v443_v50 = vshll.u32 %v414_v46, 16 }
  0x42   : > { %514 = vrot.lane.b32.xlu0 %v486_v31, %s3554_s15  ;;  %v490_v38 = vsel %vm3756_vm2, %v453_v32, 0  ;;  %v488_v45 = vsel %vm3756_vm2, %v439_v39, 0  ;;  %v491_v47 = vsel %vm3756_vm2, %v460_v43, 0  ;;  %v466_v49 = vrot.slane %v464_v44, 1 }
  0x43   : > { %532 = vrot.lane.b32.xlu1 %v413_v12, %s3553_s1  ;;  %v441_v54 = vshrl.u32 %v414_v46, 16  ;;  %v445_v55 = vrot.slane %v443_v50, 1  ;;  %v418_v57 = vpack.c.b16 %v410_v53, %v410_v53  ;;  %v3556_v4 = vmov 0  }
  0x44   : > { %522 = vrot.lane.b32.xlu2 %v490_v38, %s3554_s15  ;;  %v467_v52 = vor.u32 %v466_v49, %v462_v48  ;;  %v3799_v5 = vunpack.c.l.b16 %v3556_v4  ;;  %vm4878_vm3 = vcmask 261120   ;;  %vm4877_vm4 = vcmask 523264  }
  0x45   : > { %v446_v58 = vor.u32 %v445_v55, %v441_v54  ;;  %v471_v59 = vshll.u32 %v418_v57, 16  ;;  %v469_v62 = vshrl.u32 %v418_v57, 16  ;;  %vm4876_vm5 = vcmask 785408  }
  0x46   : > { %v492_v56 = vsel %vm3756_vm2, %v467_v52, 0  ;;  %v3807_v9 = vpack.c.b16 %v3799_v5, %v3799_v5  ;;  %vm1121_vm10 = vcmask 1040384   ;;  %vm1122_vm11 = vsmask.f32 256 }
  0x47   : > { %v489_v60 = vsel %vm3756_vm2, %v446_v58, 0  ;;  %v473_v63 = vrot.slane %v471_v59, 1  ;;  %vm3995_vm12 = vmand %vm1121_vm10, %vm1122_vm11 }
  0x48   : > { %v4879_v10 = vshll.u32 %v3807_v9, 16  ;;  %v4880_v11 = vshrl.u32 %v3807_v9, 16  ;;  %v4935_v22 = vshrl.u32 %v3807_v9, 16 }
  0x49   : > { %v474_v3 = vor.u32 %v473_v63, %v469_v62 }
  0x4a   : > { %516 = vrot.lane.b32.xlu0 %v487_v42, %s3554_s15  ;;  %v502_v12 = vrot.slane %v4879_v10, 1 }
  0x4b   : > { %549 = vrot.lane.b32.xlu1 %v488_v45, %s3555_s20  ;;  %v493_v8 = vsel %vm3756_vm2, %v474_v3, 0 }
  0x4c   : > { %524 = vrot.lane.b32.xlu2 %v491_v47, %s3554_s15  ;;  %v503_v13 = vor.u32 %v502_v12, %v4880_v11 }
  0x4e   : > { %v3822_v15 = vsel %vm3756_vm2, %v503_v13, 0 }
  0x52   : > { %547 = vrot.lane.b32.xlu0 %v487_v42, %s3555_s20 }
  0x53   : > { %555 = vrot.lane.b32.xlu1 %v491_v47, %s3555_s20 }
  0x54   : > { %557 = vrot.lane.b32.xlu2 %v492_v56, %s3555_s20 }
  0x5a   : > { %540 = vrot.lane.b32.xlu0 %v417_v41, %s3553_s1 }
  0x5b   : > { %520 = vrot.lane.b32.xlu1 %v489_v60, %s3554_s15 }
  0x5c   : > { %534 = vrot.lane.b32.xlu2 %v414_v46, %s3553_s1 }
  0x62   : > { %518 = vrot.lane.b32.xlu0 %v488_v45, %s3554_s15 }
  0x63   : > { %526 = vrot.lane.b32.xlu1 %v492_v56, %s3554_s15 }
  0x64   : > { %528 = vrot.lane.b32.xlu2 %v493_v8, %s3554_s15 }
  0x6a   : > { %536 = vrot.lane.b32.xlu0 %v3750_v14, %s3553_s1  ;;  %v3126_v14 = vld [vmem:[#allocation5 + $0x30] sm:$0xff] }
  0x6b   : > { %553 = vrot.lane.b32.xlu1 %v490_v38, %s3555_s20  ;;  %727 = vmatpush.bf16.msra.mxu0 %v3126_v14 }
  0x6c   : > { %542 = vrot.lane.b32.xlu2 %v418_v57, %s3553_s1  ;;  %3225 = vmatpush.bf16.msra.mxu2 %v3126_v14 }
  0x6f   : > { %728 = vmatpush.bf16.msra.mxu0 %v3125_v16 }
  0x70   : > { %3226 = vmatpush.bf16.msra.mxu2 %v3125_v16 }
  0x72   : > { %551 = vrot.lane.b32.xlu0 %v489_v60, %s3555_s20 }
  0x73   : > { %559 = vrot.lane.b32.xlu1 %v493_v8, %s3555_s20  ;;  %729 = vmatpush.bf16.msra.mxu0 %v3124_v17 }
  0x74   : > { %561 = vrot.lane.b32.xlu2 %v3822_v15, %s3555_s20  ;;  %3227 = vmatpush.bf16.msra.mxu2 %v3124_v17 }
  0x77   : > { %730 = vmatpush.bf16.msra.mxu0 %v3123_v18 }
  0x78   : > { %3228 = vmatpush.bf16.msra.mxu2 %v3123_v18 }
  0x7a   : > { %544 = vrot.lane.b32.xlu0 %v3807_v9, %s3553_s1 }
  0x7b   : > { %731 = vmatpush.bf16.msra.mxu0 %v3122_v19  ;;  %644 = vrot.lane.b32.xlu1 %v3315_v26, %s3553_s1 }
  0x7c   : > { %3229 = vmatpush.bf16.msra.mxu2 %v3122_v19  ;;  %647 = vrot.lane.b32.xlu2 %v3315_v26, %s3555_s20 }
  0x7f   : > { %732 = vmatpush.bf16.msra.mxu0 %v3121_v20 }
  0x80   : > { %3230 = vmatpush.bf16.msra.mxu2 %v3121_v20 }
  0x82   : > { %641 = vrot.lane.b32.xlu0 %v3315_v26, %s3554_s15 }
  0x83   : > { %733 = vmatpush.bf16.msra.mxu0 %v3120_v21 }
  0x84   : > { %3231 = vmatpush.bf16.msra.mxu2 %v3120_v21 }
  0x96   : > { %v539_v23 = vpop.permute.xlu2 %538 }
  0x9e   : > { %v523_v27 = vpop.permute.xlu2 %522 }
  0xa6   : > { %v525_v30 = vpop.permute.xlu2 %524 }
  0xad   : > { %v531_v25 = vpop.permute.xlu1 %530 }
  0xae   : > { %v558_v42 = vpop.permute.xlu2 %557 }
  0xb4   : > { %v515_v28 = vpop.permute.xlu0 %514 }
  0xb5   : > { %v533_v29 = vpop.permute.xlu1 %532  ;;  %v566_v36 = vsel %vm4878_vm3, %v3734_v1, %v515_v28  ;;  %v581_v1 = vsel %vm4878_vm3, %v3743_v6, %v525_v30  ;;  %v638_v30 = vld [vmem:[%s4866_s2] sm:$0x1] }
  0xb6   : > { %v590_v38 = vsel %vm4877_vm4, %v566_v36, %v531_v25  ;;  %v535_v54 = vpop.permute.xlu2 %534 }
  0xbc   : > { %v517_v31 = vpop.permute.xlu0 %516 }
  0xbd   : > { %v569_v32 = vsel %vm4878_vm3, %v3731_v0, %v517_v31  ;;  %v550_v33 = vpop.permute.xlu1 %549  ;;  %v578_v0 = vsel %vm4878_vm3, %v3746_v7, %v523_v27 }
  0xbe   : > { %v592_v35 = vsel %vm4877_vm4, %v569_v32, %v533_v29  ;;  %v598_v46 = vsel %vm4877_vm4, %v578_v0, %v539_v23  ;;  %v529_v58 = vpop.permute.xlu2 %528 }
  0xbf   : > { %v609_v37 = vsel %vm4876_vm5, %v592_v35, %v550_v33 }
  0xc0   : > { %v663_v43 = vunpack.c.l.b16 %v609_v37 }
  0xc4   : > { %v548_v39 = vpop.permute.xlu0 %547 }
  0xc5   : > { %v607_v40 = vsel %vm4876_vm5, %v590_v38, %v548_v39  ;;  %v556_v41 = vpop.permute.xlu1 %555 }
  0xc6   : > { %v662_v44 = vunpack.c.l.b16 %v607_v40  ;;  %v615_v47 = vsel %vm4876_vm5, %v598_v46, %v556_v41  ;;  %v543_v3 = vpop.permute.xlu2 %542 }
  0xc7   : > { %v666_v53 = vunpack.c.l.b16 %v615_v47 }
  0xc8   : > { %v670_v45 = vpack.c.b16 %v663_v43, %v662_v44 }
  0xca   : > { %734 = vmatmul.bf16.vlgmr.msra.gmra.mxu0 %v670_v45 }
  0xcc   : > { %v541_v48 = vpop.permute.xlu0 %540 }
  0xcd   : > { %v600_v49 = vsel %vm4877_vm4, %v581_v1, %v541_v48  ;;  %v521_v50 = vpop.permute.xlu1 %520 }
  0xce   : > { %v617_v52 = vsel %vm4876_vm5, %v600_v49, %v558_v42  ;;  %v575_v6 = vsel %vm4878_vm3, %v3767_v34, %v521_v50  ;;  %v562_v20 = vpop.permute.xlu2 %561 }
  0xcf   : > { %v667_v55 = vunpack.c.l.b16 %v617_v52 }
  0xd1   : > { %v672_v56 = vpack.c.b16 %v667_v55, %v666_v53 }
  0xd3   : > { %744 = vmatmul.bf16.vlgmr.msra.gmra.mxu2 %v672_v56 }
  0xd4   : > { %v519_v7 = vpop.permute.xlu0 %518 }
  0xd5   : > { %v527_v57 = vpop.permute.xlu1 %526  ;;  %v572_v62 = vsel %vm4878_vm3, %v3737_v2, %v519_v7  ;;  %v587_v2 = vsel %vm4878_vm3, %v3785_v51, %v529_v58 }
  0xd6   : > { %v594_v8 = vsel %vm4877_vm4, %v572_v62, %v535_v54  ;;  %v584_v17 = vsel %vm4878_vm3, %v3761_v24, %v527_v57  ;;  %v648_v36 = vpop.permute.xlu2 %647 }
  0xd7   : > { %v602_v19 = vsel %vm4877_vm4, %v584_v17, %v543_v3 }
  0xdc   : > { %v537_v59 = vpop.permute.xlu0 %536 }
  0xdd   : > { %v554_v60 = vpop.permute.xlu1 %553  ;;  %v596_v61 = vsel %vm4877_vm4, %v575_v6, %v537_v59 }
  0xde   : > { %v613_v63 = vsel %vm4876_vm5, %v596_v61, %v554_v60 }
  0xdf   : > { %v665_v14 = vunpack.c.l.b16 %v613_v63 }
  0xe4   : > { %v552_v12 = vpop.permute.xlu0 %551 }
  0xe5   : > { %v611_v13 = vsel %vm4876_vm5, %v594_v8, %v552_v12  ;;  %v560_v18 = vpop.permute.xlu1 %559 }
  0xe6   : > { %v664_v16 = vunpack.c.l.b16 %v611_v13  ;;  %v619_v21 = vsel %vm4876_vm5, %v602_v19, %v560_v18 }
  0xe7   : > { %v668_v27 = vunpack.c.l.b16 %v619_v21 }
  0xe8   : > { %v671_v34 = vpack.c.b16 %v665_v14, %v664_v16 }
  0xea   : > { %739 = vmatmul.bf16.gmra.mxu0 %v671_v34 }
  0xec   : > { %v545_v23 = vpop.permute.xlu0 %544 }
  0xed   : > { %v604_v25 = vsel %vm4877_vm4, %v587_v2, %v545_v23  ;;  %v645_v51 = vpop.permute.xlu1 %644 }
  0xee   : > { %v621_v26 = vsel %vm4876_vm5, %v604_v25, %v562_v20 }
  0xef   : > { %v669_v28 = vunpack.c.l.b16 %v621_v26 }
  0xf1   : > { %v673_v29 = vpack.c.b16 %v669_v28, %v668_v27 }
  0xf3   : > { %749 = vmatmul.bf16.gmra.mxu2 %v673_v29 }
  0xf4   : > { %v642_v31 = vpop.permute.xlu0 %641 }
  0xf5   : > { %v650_v32 = vsel %vm4878_vm3, %v638_v30, %v642_v31  ;;  %v3557_v30 = vmov 256.0  }
  0xf6   : > { %v651_v35 = vsel %vm4877_vm4, %v650_v32, %v645_v51  ;;  %3317 = vrcp.f32 %v3557_v30  ;;  %v3132_v30 = vld [vmem:[#allocation7 + $0x20] sm:$0xff] }
  0xf7   : > { %v652_v37 = vsel %vm4876_vm5, %v651_v35, %v648_v36 }
  0xf8   : > { %v653_v39 = vperm.slane %v652_v37, 0 }
  0xfc   : > { %v3318_v31 = vpop.eup %3317 }
  0xfd   : > { %v818_v32 = vmul.f32 256.0, %v3318_v31  ;;  %vm822_vm6 = vweird.f32 %v3318_v31 }
  0xff   : > { %v819_v51 = vsub.f32 1.0, %v818_v32  ;;  %v3139_v32 = vld [vmem:[#allocation7 + $0x58] sm:$0xff] }
 0x101   : > { %v820_v37 = vmul.f32 %v3318_v31, %v819_v51  ;;  %v3131_v51 = vld [vmem:[#allocation7 + $0x18] sm:$0xff] }
 0x147   : > { %v735_v24 = vpop.f32.mrf.mxu0 }
 0x148   : > { %v3876_v42 = vadd.f32 %v735_v24, %v653_v39 }
 0x14a   : > { %v768_v45 = vmul.f32 %v3876_v42, %v3876_v42 }
 0x14f   : > { %v737_v33 = vpop.f32.mrf.mxu0 }
 0x150   : > { %v3874_v41 = vadd.f32 %v737_v33, %v653_v39 }
 0x152   : > { %v769_v44 = vmul.f32 %v3874_v41, %v3874_v41  ;;  %v755_v46 = vadd.f32 %v3874_v41, %v3876_v42 }
 0x154   : > { %v776_v49 = vadd.f32 %v769_v44, %v768_v45 }
 0x156   : > { %v745_v38 = vpop.f32.mrf.mxu2 }
 0x157   : > { %v3893_v53 = vadd.f32 %v745_v38, %v653_v39 }
 0x159   : > { %v772_v57 = vmul.f32 %v3893_v53, %v3893_v53 }
 0x15e   : > { %v747_v0 = vpop.f32.mrf.mxu2 }
 0x15f   : > { %v3898_v58 = vadd.f32 %v747_v0, %v653_v39 }
 0x161   : > { %v773_v61 = vmul.f32 %v3898_v58, %v3898_v58 }
 0x167   : > { %v740_v40 = vpop.f32.mrf.mxu0 }
 0x168   : > { %v3878_v43 = vadd.f32 %v740_v40, %v653_v39 }
 0x16a   : > { %v770_v1 = vmul.f32 %v3878_v43, %v3878_v43  ;;  %v756_v50 = vadd.f32 %v755_v46, %v3878_v43 }
 0x16c   : > { %v777_v54 = vadd.f32 %v776_v49, %v770_v1 }
 0x16f   : > { %v742_v47 = vpop.f32.mrf.mxu0 }
 0x170   : > { %v3888_v48 = vadd.f32 %v742_v47, %v653_v39 }
 0x172   : > { %v771_v52 = vmul.f32 %v3888_v48, %v3888_v48  ;;  %v757_v55 = vadd.f32 %v756_v50, %v3888_v48 }
 0x174   : > { %v778_v56 = vadd.f32 %v777_v54, %v771_v52  ;;  %v758_v59 = vadd.f32 %v757_v55, %v3893_v53 }
 0x176   : > { %v750_v7 = vpop.f32.mrf.mxu2  ;;  %v779_v6 = vadd.f32 %v778_v56, %v772_v57  ;;  %v759_v62 = vadd.f32 %v758_v59, %v3898_v58 }
 0x177   : > { %v3901_v60 = vadd.f32 %v750_v7, %v653_v39 }
 0x178   : > { %v780_v3 = vadd.f32 %v779_v6, %v773_v61 }
 0x179   : > { %v774_v63 = vmul.f32 %v3901_v60, %v3901_v60  ;;  %v760_v12 = vadd.f32 %v759_v62, %v3901_v60 }
 0x17b   : > { %v781_v14 = vadd.f32 %v780_v3, %v774_v63  ;;  %v815_v3 = vld [vmem:[%s4867_s3] sm:$0x1] }
 0x17e   : > { %v752_v8 = vpop.f32.mrf.mxu2 }
 0x17f   : > { %v3909_v13 = vadd.f32 %v752_v8, %v653_v39  ;;  %v821_v39 = vadd.f32 %v3318_v31, %v820_v37  ;;  %v3130_v37 = vld [vmem:[#allocation7 + $0x10] sm:$0xff] }
 0x181   : > { %v761_v16 = vadd.f32 %v760_v12, %v3909_v13  ;;  %v775_v17 = vmul.f32 %v3909_v13, %v3909_v13  ;;  %v3920_v0 = vsel %vm822_vm6, %v3318_v31, %v821_v39  ;;  %v3156_v31 = vld [vmem:[#allocation7 + $0xe0] sm:$0xff] }
 0x183   : > { %v762_v34 = vrot.slane %v761_v16, 4  ;;  %v782_v18 = vadd.f32 %v781_v14, %v775_v17 }
 0x185   : > { %v763_v19 = vadd.f32 %v762_v34, %v761_v16  ;;  %v783_v20 = vrot.slane %v782_v18, 4  ;;  %v816_v34 = vld [vmem:[%s4868_s4] sm:$0x1] }
 0x187   : > { %v764_v2 = vrot.slane %v763_v19, 2  ;;  %v784_v21 = vadd.f32 %v783_v20, %v782_v18  ;;  %v3143_v20 = vld [vmem:[#allocation7 + $0x78] sm:$0xff] }
 0x188   : > { %1235 = vmatpush.bf16.msra.mxu1 %v3143_v20  ;;  %3232 = vmatpush.bf16.msra.mxu3 %v3143_v20 }
 0x189   : > { %v765_v23 = vadd.f32 %v764_v2, %v763_v19  ;;  %v785_v25 = vrot.slane %v784_v21, 2  ;;  %v3135_v2 = vld [vmem:[#allocation7 + $0x38] sm:$0xff] }
 0x18a   : > { %1336 = vmatpush.bf16.msrb.mxu2 %v3135_v2  ;;  %v3151_v2 = vld [vmem:[#allocation7 + $0xb8] sm:$0xff] }
 0x18b   : > { %v766_v26 = vrot.slane %v765_v23, 1  ;;  %v786_v27 = vadd.f32 %v785_v25, %v784_v21  ;;  %v3159_v21 = vld [vmem:[#allocation7 + $0xf8] sm:$0xff]  ;;  %v3134_v25 = vld [vmem:[#allocation7 + $0x30] sm:$0xff] }
 0x18c   : > { %1694 = vmatpush.bf16.msrb.mxu0 %v3159_v21  ;;  %v3167_v21 = vld [vmem:[#allocation7 + $0x138] sm:$0xff] }
 0x18d   : > { %v767_v28 = vadd.f32 %v766_v26, %v765_v23  ;;  %v787_v29 = vrot.slane %v786_v27, 1  ;;  %v3142_v23 = vld [vmem:[#allocation7 + $0x70] sm:$0xff] }
 0x18e   : > { %v3158_v26 = vld [vmem:[#allocation7 + $0xf0] sm:$0xff]  ;;  %1236 = vmatpush.bf16.msra.mxu1 %v3142_v23  ;;  %3233 = vmatpush.bf16.msra.mxu3 %v3142_v23 }
 0x18f   : > { %794 = vrot.lane.b32.xlu1 %v767_v28, %s3553_s1  ;;  %790 = vrot.lane.b32.xlu0 %v767_v28, %s3555_s20  ;;  %v788_v24 = vadd.f32 %v787_v29, %v786_v27  ;;  %v3141_v27 = vld [vmem:[#allocation7 + $0x68] sm:$0xff] }
 0x190   : > { %1337 = vmatpush.bf16.msrb.mxu2 %v3134_v25  ;;  %1695 = vmatpush.bf16.msrb.mxu0 %v3158_v26  ;;  %v3157_v29 = vld [vmem:[#allocation7 + $0xe8] sm:$0xff]  ;;  %v3128_v25 = vld [vmem:[#allocation7] sm:$0xff] }
 0x191   : > { %803 = vrot.lane.b32.xlu2 %v788_v24, %s3555_s20  ;;  %v3153_v26 = vld [vmem:[#allocation7 + $0xc8] sm:$0xff] }
 0x192   : > { %1237 = vmatpush.bf16.msra.mxu1 %v3141_v27  ;;  %3234 = vmatpush.bf16.msra.mxu3 %v3141_v27 }
 0x194   : > { %1696 = vmatpush.bf16.msrb.mxu0 %v3157_v29  ;;  %v3150_v29 = vld [vmem:[#allocation7 + $0xb0] sm:$0xff] }
 0x197   : > { %807 = vrot.lane.b32.xlu1 %v788_v24, %s3553_s1  ;;  %798 = vrot.lane.b32.xlu0 %v767_v28, %s3554_s15 }
 0x198   : > { %1697 = vmatpush.bf16.msrb.mxu0 %v3156_v31 }
 0x199   : > { %811 = vrot.lane.b32.xlu2 %v788_v24, %s3554_s15 }
 0x1eb   : > { %v804_v33 = vpop.permute.xlu2 %803 }
 0x1ec   : > { %v806_v40 = vadd.f32 %v804_v33, %v788_v24  ;;  %v3140_v24 = vld [vmem:[#allocation7 + $0x60] sm:$0xff]  ;;  %v3155_v33 = vld [vmem:[#allocation7 + $0xd8] sm:$0xff] }
 0x1ed   : > { %1238 = vmatpush.bf16.msra.mxu1 %v3140_v24  ;;  %3235 = vmatpush.bf16.msra.mxu3 %v3140_v24  ;;  %v3166_v24 = vld [vmem:[#allocation7 + $0x130] sm:$0xff] }
 0x1ee   : > { %1698 = vmatpush.bf16.msrb.mxu0 %v3155_v33 }
 0x1f1   : > { %1239 = vmatpush.bf16.msra.mxu1 %v3139_v32  ;;  %3236 = vmatpush.bf16.msra.mxu3 %v3139_v32  ;;  %v1060_v32 = vrot.slane %v3556_v4, 7 }
 0x1f3   : > { %v812_v49 = vpop.permute.xlu2 %811 }
 0x201   : > { %v795_v35 = vpop.permute.xlu1 %794  ;;  %v791_v36 = vpop.permute.xlu0 %790 }
 0x202   : > { %v793_v38 = vadd.f32 %v791_v36, %v767_v28  ;;  %v3133_v28 = vld [vmem:[#allocation7 + $0x28] sm:$0xff] }
 0x203   : > { %1338 = vmatpush.bf16.msrb.mxu2 %v3133_v28 }
 0x204   : > { %v797_v44 = vadd.f32 %v795_v35, %v793_v38  ;;  %v3138_v35 = vld [vmem:[#allocation7 + $0x50] sm:$0xff] }
 0x205   : > { %1240 = vmatpush.bf16.msra.mxu1 %v3138_v35  ;;  %3237 = vmatpush.bf16.msra.mxu3 %v3138_v35 }
 0x207   : > { %1339 = vmatpush.bf16.msrb.mxu2 %v3132_v30 }
 0x209   : > { %v808_v45 = vpop.permute.xlu1 %807  ;;  %v799_v46 = vpop.permute.xlu0 %798 }
 0x20a   : > { %v810_v1 = vadd.f32 %v808_v45, %v806_v40  ;;  %v801_v47 = vadd.f32 %v799_v46, %v797_v44  ;;  %v3137_v45 = vld [vmem:[#allocation7 + $0x48] sm:$0xff] }
 0x20b   : > { %1340 = vmatpush.bf16.msrb.mxu2 %v3131_v51  ;;  %1241 = vmatpush.bf16.msra.mxu1 %v3137_v45 }
 0x20c   : > { %v814_v50 = vadd.f32 %v812_v49, %v810_v1  ;;  %v824_v52 = vmul.f32 %v3920_v0, %v801_v47  ;;  %3238 = vmatpush.bf16.msra.mxu3 %v3137_v45  ;;  %v3136_v1 = vld [vmem:[#allocation7 + $0x40] sm:$0xff] }
 0x20e   : > { %v825_v54 = vmul.f32 %v3920_v0, %v814_v50  ;;  %v826_v55 = vmul.f32 %v824_v52, %v824_v52 }
 0x20f   : > { %1341 = vmatpush.bf16.msrb.mxu2 %v3130_v37  ;;  %1242 = vmatpush.bf16.msra.mxu1 %v3136_v1  ;;  %v3152_v37 = vld [vmem:[#allocation7 + $0xc0] sm:$0xff] }
 0x210   : > { %v827_v56 = vsub.f32 %v825_v54, %v826_v55  ;;  %3239 = vmatpush.bf16.msra.mxu3 %v3136_v1 }
 0x212   : > { %v828_v7 = vmax.f32 %v827_v56, 0.0 }
 0x213   : > { %1804 = vmatpush.bf16.msrb.mxu1 %v3167_v21 }
 0x214   : > { %v829_v57 = vadd.f32 1e-06, %v828_v7  ;;  %1486 = vmatpush.bf16.msrb.mxu3 %v3151_v2 }
 0x216   : > { %3319 = vrsqrt.f32 %v829_v57  ;;  %vm836_vm8 = vweird.f32 %v829_v57 }
 0x217   : > { %1805 = vmatpush.bf16.msrb.mxu1 %v3166_v24 }
 0x218   : > { %1487 = vmatpush.bf16.msrb.mxu3 %v3150_v29 }
 0x21c   : > { %v3320_v59 = vpop.eup %3319 }
 0x21d   : > { %v831_v6 = vmul.f32 %v3320_v59, %v829_v57  ;;  %vm837_vm7 = vweird.f32 %v3320_v59 }
 0x21e   : > { %vm838_vm9 = vmor %vm836_vm8, %vm837_vm7 }
 0x21f   : > { %v832_v61 = vmul.f32 %v3320_v59, %v831_v6 }
 0x221   : > { %v833_v62 = vmul.f32 0.5, %v832_v61 }
 0x223   : > { %v834_v63 = vsub.f32 1.5, %v833_v62 }
 0x225   : > { %v835_v8 = vmul.f32 %v3320_v59, %v834_v63 }
 0x227   : > { %v839_v12 = vsel %vm838_vm9, %v3320_v59, %v835_v8 }
 0x228   : > { %v840_v14 = vmul.f32 %v839_v12, %v815_v3 }
 0x22a   : > { %v841_v16 = vmul.f32 %v840_v14, %v824_v52  ;;  %v844_v17 = vperm.slane %v840_v14, 0 }
 0x22c   : > { %851 = vrot.lane.b32.xlu2 %v844_v17, %s3555_s20  ;;  %848 = vrot.lane.b32.xlu1 %v844_v17, %s3553_s1  ;;  %v842_v18 = vsub.f32 %v816_v34, %v841_v16 }
 0x22d   : > { %845 = vrot.lane.b32.xlu0 %v844_v17, %s3554_s15 }
 0x22e   : > { %v867_v19 = vperm.slane %v842_v18, 0 }
 0x234   : > { %874 = vrot.lane.b32.xlu2 %v867_v19, %s3555_s20  ;;  %871 = vrot.lane.b32.xlu1 %v867_v19, %s3553_s1 }
 0x235   : > { %868 = vrot.lane.b32.xlu0 %v867_v19, %s3554_s15  ;;  %v3154_v19 = vld [vmem:[#allocation7 + $0xd0] sm:$0xff] }
 0x236   : > { %1699 = vmatpush.bf16.msrb.mxu0 %v3154_v19 }
 0x23a   : > { %1700 = vmatpush.bf16.msrb.mxu0 %v3153_v26  ;;  %v3148_v26 = vld [vmem:[#allocation7 + $0xa0] sm:$0xff] }
 0x23e   : > { %1701 = vmatpush.bf16.msrb.mxu0 %v3152_v37 }
 0x286   : > { %v852_v38 = vpop.permute.xlu2 %851 }
 0x28e   : > { %v875_v54 = vpop.permute.xlu2 %874 }
 0x29e   : > { %v849_v36 = vpop.permute.xlu1 %848 }
 0x29f   : > { %v846_v39 = vpop.permute.xlu0 %845 }
 0x2a0   : > { %v854_v40 = vsel %vm4878_vm3, %v840_v14, %v846_v39  ;;  %v3149_v39 = vld [vmem:[#allocation7 + $0xa8] sm:$0xff] }
 0x2a1   : > { %v855_v44 = vsel %vm4877_vm4, %v854_v40, %v849_v36  ;;  %v3165_v40 = vld [vmem:[#allocation7 + $0x128] sm:$0xff]  ;;  %1488 = vmatpush.bf16.msrb.mxu3 %v3149_v39  ;;  %v3163_v39 = vld [vmem:[#allocation7 + $0x118] sm:$0xff] }
 0x2a2   : > { %v856_v46 = vsel %vm4876_vm5, %v855_v44, %v852_v38  ;;  %1806 = vmatpush.bf16.msrb.mxu1 %v3165_v40 }
 0x2a3   : > { %v3939_v47 = vperm.slane %v856_v46, 0  ;;  %v1124_v46 = vsel %vm3995_vm12, 0, %v1060_v32 }
 0x2a5   : > { %v858_v7 = vmul.f32 %v3939_v47, %v3876_v42  ;;  %v861_v59 = vmul.f32 %v3939_v47, %v3888_v48  ;;  %v862_v6 = vmul.f32 %v3939_v47, %v3893_v53  ;;  %v859_v61 = vmul.f32 %v3939_v47, %v3874_v41  ;;  %1489 = vmatpush.bf16.msrb.mxu3 %v3148_v26 }
 0x2a6   : > { %v872_v49 = vpop.permute.xlu1 %871  ;;  %v860_v62 = vmul.f32 %v3939_v47, %v3878_v43  ;;  %v863_v63 = vmul.f32 %v3939_v47, %v3898_v58  ;;  %v864_v43 = vmul.f32 %v3939_v47, %v3901_v60 }
 0x2a7   : > { %v869_v50 = vpop.permute.xlu0 %868 }
 0x2a8   : > { %v877_v52 = vsel %vm4878_vm3, %v842_v18, %v869_v50  ;;  %v3129_v18 = vld [vmem:[#allocation7 + $0x8] sm:$0xff] }
 0x2a9   : > { %v878_v55 = vsel %vm4877_vm4, %v877_v52, %v872_v49  ;;  %1342 = vmatpush.bf16.msrb.mxu2 %v3129_v18 }
 0x2aa   : > { %v879_v56 = vsel %vm4876_vm5, %v878_v55, %v875_v54 }
 0x2ab   : > { %v3946_v57 = vperm.slane %v879_v56, 0 }
 0x2ad   : > { %v3959_v3 = vadd.f32 %v3946_v57, %v858_v7  ;;  %v3962_v42 = vadd.f32 %v3946_v57, %v861_v59  ;;  %v3965_v48 = vadd.f32 %v3946_v57, %v862_v6  ;;  %v3968_v53 = vadd.f32 %v3946_v57, %v859_v61  ;;  %1343 = vmatpush.bf16.msrb.mxu2 %v3128_v25  ;;  %v3145_v25 = vld [vmem:[#allocation7 + $0x88] sm:$0xff] }
 0x2ae   : > { %v3971_v41 = vadd.f32 %v3946_v57, %v860_v62  ;;  %v3979_v14 = vadd.f32 %v3946_v57, %v863_v63  ;;  %v3984_v34 = vadd.f32 %v3946_v57, %v864_v43  ;;  %v4032_v43 = vunpack.c.l.b16 %v1124_v46  ;;  %v3162_v63 = vld [vmem:[#allocation7 + $0x110] sm:$0xff] }
 0x2af   : > { %v2810_v58 = vmul.f32 -1.442695, %v3959_v3  ;;  %v2813_v8 = vmul.f32 -1.442695, %v3962_v42  ;;  %v2814_v12 = vmul.f32 -1.442695, %v3965_v48 }
 0x2b0   : > { %v2811_v16 = vmul.f32 -1.442695, %v3968_v53  ;;  %v2812_v17 = vmul.f32 -1.442695, %v3971_v41  ;;  %v2815_v60 = vmul.f32 -1.442695, %v3979_v14 }
 0x2b1   : > { %3321 = vpow2.f32 %v2810_v58  ;;  %v2816_v20 = vmul.f32 -1.442695, %v3984_v34 }
 0x2b2   : > { %3323 = vpow2.f32 %v2813_v8 }
 0x2b3   : > { %3325 = vpow2.f32 %v2814_v12 }
 0x2b4   : > { %3327 = vpow2.f32 %v2811_v16 }
 0x2b5   : > { %3329 = vpow2.f32 %v2812_v17 }
 0x2b6   : > { %3331 = vpow2.f32 %v2815_v60 }
 0x2b7   : > { %v3322_v23 = vpop.eup %3321  ;;  %3333 = vpow2.f32 %v2816_v20 }
 0x2b8   : > { %v3324_v27 = vpop.eup %3323  ;;  %v3988_v28 = vadd.f32 1.0, %v3322_v23 }
 0x2b9   : > { %v3326_v30 = vpop.eup %3325  ;;  %v3990_v31 = vadd.f32 1.0, %v3324_v27  ;;  %v3164_v27 = vld [vmem:[#allocation7 + $0x120] sm:$0xff] }
 0x2ba   : > { %v3328_v51 = vpop.eup %3327  ;;  %3335 = vrcp.f32 %v3988_v28  ;;  %v3999_v36 = vadd.f32 1.0, %v3326_v30  ;;  %v932_v38 = vand.u32 2147483648, %v3988_v28  ;;  %v930_v45 = vand.u32 2147483647, %v3988_v28  ;;  %1807 = vmatpush.bf16.msrb.mxu1 %v3164_v27 }
 0x2bb   : > { %v3330_v35 = vpop.eup %3329  ;;  %3337 = vrcp.f32 %v3990_v31  ;;  %v975_v1 = vand.u32 2147483647, %v3990_v31  ;;  %v977_v49 = vand.u32 2147483648, %v3990_v31  ;;  %v4009_v50 = vadd.f32 1.0, %v3328_v51 }
 0x2bc   : > { %v3332_v44 = vpop.eup %3331  ;;  %3339 = vrcp.f32 %v3999_v36  ;;  %v4011_v52 = vadd.f32 1.0, %v3330_v35  ;;  %vm926_vm13 = vweird.f32 %v3988_v28  ;;  %v992_v55 = vand.u32 2147483648, %v3999_v36 }
 0x2bd   : > { %v3334_v54 = vpop.eup %3333  ;;  %v4017_v7 = vor.u32 1.1754944e-38, %v932_v38  ;;  %vm971_vm14 = vweird.f32 %v3990_v31  ;;  %v990_v59 = vand.u32 2147483647, %v3999_v36  ;;  %3341 = vrcp.f32 %v4009_v50  ;;  %v3147_v38 = vld [vmem:[#allocation7 + $0x98] sm:$0xff] }
 0x2be   : > { %v4022_v6 = vadd.f32 1.0, %v3332_v44  ;;  %vm4028_vm15 = vcmp.eq.f32.partialorder %v930_v45, 8.507059e+37  ;;  %v947_v58 = vand.u32 2147483648, %v4009_v50  ;;  %3343 = vrcp.f32 %v4011_v52  ;;  %1490 = vmatpush.bf16.msrb.mxu3 %v3147_v38  ;;  %1808 = vmatpush.bf16.msrb.mxu1 %v3163_v39 }
 0x2bf   : > { %vm4038_vm0 = vcmp.eq.f32.partialorder %v975_v1, 8.507059e+37  ;;  %v978_v16 = vor.u32 1.1754944e-38, %v977_v49  ;;  %vm986_vm1 = vweird.f32 %v3999_v36  ;;  %v4043_v17 = vadd.f32 1.0, %v3334_v54 }
 0x2c0   : > { %v4015_v56 = vpop.eup %3335  ;;  %v4047_v19 = vor.u32 1.1754944e-38, %v992_v55  ;;  %v945_v20 = vand.u32 2147483647, %v4009_v50  ;;  %v962_v2 = vand.u32 2147483648, %v4011_v52  ;;  %vm4054_vm7 = vcmp.eq.f32.partialorder %v990_v59, 8.507059e+37 }
 0x2c1   : > { %v4024_v61 = vpop.eup %3337  ;;  %v922_v62 = vmul.f32 %v4015_v56, %v3988_v28  ;;  %vm927_vm6 = vweird.f32 %v4015_v56  ;;  %3345 = vrcp.f32 %v4022_v6  ;;  %vm941_vm9 = vweird.f32 %v4009_v50 }
 0x2c2   : > { %v967_v8 = vmul.f32 %v4024_v61, %v3990_v31  ;;  %v4045_v60 = vpop.eup %3339  ;;  %vm972_vm8 = vweird.f32 %v4024_v61  ;;  %v4062_v24 = vor.u32 1.1754944e-38, %v947_v58  ;;  %v960_v30 = vand.u32 2147483647, %v4011_v52  ;;  %vm928_vm4 = vmor %vm926_vm13, %vm927_vm6  ;;  %1809 = vmatpush.bf16.msrb.mxu1 %v3162_v63 }
 0x2c3   : > { %v923_v18 = vsub.f32 1.0, %v922_v62  ;;  %v982_v23 = vmul.f32 %v4045_v60, %v3999_v36  ;;  %v4065_v32 = vpop.eup %3341  ;;  %vm987_vm10 = vweird.f32 %v4045_v60  ;;  %v4070_v37 = vor.u32 1.1754944e-38, %v962_v2  ;;  %vm973_vm3 = vmor %vm971_vm14, %vm972_vm8  ;;  %v3146_v2 = vld [vmem:[#allocation7 + $0x90] sm:$0xff] }
 0x2c4   : > { %v968_v21 = vsub.f32 1.0, %v967_v8  ;;  %v4072_v40 = vpop.eup %3343  ;;  %v937_v45 = vmul.f32 %v4065_v32, %v4009_v50  ;;  %vm4077_vm5 = vcmp.eq.f32.partialorder %v945_v20, 8.507059e+37  ;;  %v1005_v1 = vand.u32 2147483647, %v4022_v6  ;;  %1491 = vmatpush.bf16.msrb.mxu3 %v3146_v2 }
 0x2c5   : > { %v924_v29 = vmul.f32 %v4015_v56, %v923_v18  ;;  %v983_v35 = vsub.f32 1.0, %v982_v23  ;;  %3347 = vrcp.f32 %v4043_v17  ;;  %v952_v55 = vmul.f32 %v4072_v40, %v4011_v52 }
 0x2c6   : > { %v969_v51 = vmul.f32 %v4024_v61, %v968_v21  ;;  %v1007_v59 = vand.u32 2147483648, %v4022_v6  ;;  %v938_v58 = vsub.f32 1.0, %v937_v45  ;;  %vm942_vm11 = vweird.f32 %v4065_v32 }
 0x2c7   : > { %v925_v44 = vadd.f32 %v4015_v56, %v924_v29  ;;  %v984_v54 = vmul.f32 %v4045_v60, %v983_v35  ;;  %vm957_vm13 = vweird.f32 %v4072_v40  ;;  %vm4099_vm6 = vcmp.eq.f32.partialorder %v960_v30, 8.507059e+37  ;;  %v4103_v8 = vpop.eup %3345 }
 0x2c8   : > { %v970_v49 = vadd.f32 %v4024_v61, %v969_v51  ;;  %v953_v20 = vsub.f32 1.0, %v952_v55  ;;  %vm1002_vm14 = vweird.f32 %v4103_v8  ;;  %1492 = vmatpush.bf16.msrb.mxu3 %v3145_v25  ;;  %vm1016_vm8 = vweird.f32 %v4043_v17 }
 0x2c9   : > { %v929_v62 = vsel %vm928_vm4, %v4015_v56, %v925_v44  ;;  %v985_v31 = vadd.f32 %v4045_v60, %v984_v54  ;;  %vm988_vm4 = vmor %vm986_vm1, %vm987_vm10  ;;  %vm4920_vm1 = vweird.f32 %v4011_v52  ;;  %v3161_v54 = vld [vmem:[#allocation7 + $0x108] sm:$0xff]  ;;  %v1020_v25 = vand.u32 2147483647, %v4043_v17 }
 0x2ca   : > { %v934_v56 = vsel %vm4028_vm15, %v4017_v7, %v929_v62  ;;  %v974_v18 = vsel %vm973_vm3, %v4024_v61, %v970_v49  ;;  %v939_v7 = vmul.f32 %v4065_v32, %v938_v58  ;;  %v997_v61 = vmul.f32 %v4103_v8, %v4022_v6  ;;  %vm943_vm15 = vmor %vm941_vm9, %vm942_vm11  ;;  %1810 = vmatpush.bf16.msrb.mxu1 %v3161_v54 }
 0x2cb   : > { %v1041_v21 = vmul.f32 %v934_v56, %v3959_v3  ;;  %v979_v23 = vsel %vm4038_vm0, %v978_v16, %v974_v18  ;;  %v989_v26 = vsel %vm988_vm4, %v4045_v60, %v985_v31  ;;  %v954_v3 = vmul.f32 %v4072_v40, %v953_v20  ;;  %v4125_v12 = vpop.eup %3347 }
 0x2cc   : > { %v1044_v27 = vmul.f32 %v979_v23, %v3962_v42  ;;  %vm1001_vm3 = vweird.f32 %v4022_v6  ;;  %v994_v16 = vsel %vm4054_vm7, %v4047_v19, %v989_v26  ;;  %v940_v29 = vadd.f32 %v4065_v32, %v939_v7  ;;  %vm958_vm7 = vmor %vm4920_vm1, %vm957_vm13  ;;  %v3160_v23 = vld [vmem:[#allocation7 + $0x100] sm:$0xff]  ;;  %v3175_v7 = vld [vmem:[#allocation7 + $0x178] sm:$0xff] }
 0x2cd   : > { %v4127_v36 = vpack.c.bf16 %v1041_v21, %v1041_v21  ;;  %v998_v30 = vsub.f32 1.0, %v997_v61  ;;  %v1045_v60 = vmul.f32 %v994_v16, %v3965_v48  ;;  %v955_v51 = vadd.f32 %v4072_v40, %v954_v3  ;;  %v3144_v21 = vld [vmem:[#allocation7 + $0x80] sm:$0xff]  ;;  %1962 = vmatpush.bf16.msra.mxu2 %v3175_v7 }
 0x2ce   : > { %v4134_v42 = vpack.c.bf16 %v1044_v27, %v1044_v27  ;;  %vm4141_vm0 = vcmp.eq.f32.partialorder %v1005_v1, 8.507059e+37  ;;  %v1012_v19 = vmul.f32 %v4125_v12, %v4043_v17  ;;  %v944_v50 = vsel %vm943_vm15, %v4065_v32, %v940_v29  ;;  %v3183_v29 = vld [vmem:[#allocation7 + $0x1b8] sm:$0xff]  ;;  %1493 = vmatpush.bf16.msrb.mxu3 %v3144_v21  ;;  %1811 = vmatpush.bf16.msrb.mxu1 %v3160_v23 }
 0x2cf   : > { %v4148_v48 = vunpack.c.l.b16 %v4127_v36  ;;  %v1065_v38 = vshrl.u32 %v4127_v36, 16  ;;  %v1068_v39 = vshll.u32 %v4127_v36, 16  ;;  %v4157_v44 = vpack.c.bf16 %v1045_v60, %v1045_v60 }
 0x2d0   : > { %v4160_v45 = vunpack.c.l.b16 %v4134_v42  ;;  %v949_v1 = vsel %vm4077_vm5, %v4062_v24, %v944_v50  ;;  %v959_v49 = vsel %vm958_vm7, %v4072_v40, %v955_v51  ;;  %v999_v40 = vmul.f32 %v4103_v8, %v998_v30  ;;  %vm1003_vm5 = vmor %vm1001_vm3, %vm1002_vm14  ;;  %v3174_v51 = vld [vmem:[#allocation7 + $0x170] sm:$0xff] }
 0x2d1   : > { %v1179_v32 = vpack.c.b16 %v4148_v48, %v3799_v5  ;;  %v4170_v52 = vpack.c.b16 %v4148_v48, %v4148_v48  ;;  %v1067_v55 = vrot.slane %v1065_v38, 7  ;;  %v1042_v62 = vmul.f32 %v949_v1, %v3968_v53  ;;  %1963 = vmatpush.bf16.msra.mxu2 %v3174_v51 }
 0x2d2   : > { %v4176_v58 = vunpack.c.l.b16 %v4157_v44  ;;  %v964_v24 = vsel %vm4099_vm6, %v4070_v37, %v959_v49  ;;  %v1013_v46 = vsub.f32 1.0, %v1012_v19  ;;  %v1008_v53 = vor.u32 1.1754944e-38, %v1007_v59 }
 0x2d3   : > { %1243 = vmatmul.bf16.vlgmr.msra.gmra.mxu1 %v1179_v32  ;;  %v1070_v56 = vor.u32 %v1068_v39, %v1067_v55  ;;  %v4184_v18 = vpack.c.bf16 %v1042_v62, %v1042_v62  ;;  %v1534_v31 = vshrl.u32 %v4170_v52, 16  ;;  %v1043_v28 = vmul.f32 %v964_v24, %v3971_v41  ;;  %v3182_v32 = vld [vmem:[#allocation7 + $0x1b0] sm:$0xff]  ;;  %v3191_v55 = vld [vmem:[#allocation7 + $0x1f8] sm:$0xff] }
 0x2d4   : > { %v4189_v20 = vpack.c.b16 %v4176_v58, %v4160_v45  ;;  %v1000_v37 = vadd.f32 %v4103_v8, %v999_v40  ;;  %v1014_v2 = vmul.f32 %v4125_v12, %v1013_v46  ;;  %v1537_v26 = vshll.u32 %v4170_v52, 16  ;;  %v3199_v62 = vld [vmem:[#allocation7 + $0x238] sm:$0xff]  ;;  %2182 = vmatpush.bf16.msra.mxu0 %v3191_v55 }
 0x2d5   : > { %v1125_v61 = vsel %vm3995_vm12, 0, %v1070_v56  ;;  %v4197_v63 = vunpack.c.l.b16 %v4184_v18  ;;  %v1536_v59 = vrot.slane %v1534_v31, 7  ;;  %v4207_v27 = vpack.c.bf16 %v1043_v28, %v1043_v28  ;;  %2293 = vmatpush.bf16.msra.mxu1 %v3199_v62 }
 0x2d6   : > { %1253 = vmatmul.bf16.vlgmr.msra.gmra.mxu3 %v4189_v20  ;;  %v1273_v41 = vunpack.c.l.b16 %v1125_v61  ;;  %v1004_v3 = vsel %vm1003_vm5, %v4103_v8, %v1000_v37  ;;  %v1015_v16 = vadd.f32 %v4125_v12, %v1014_v2  ;;  %v865_v19 = vmul.f32 %v3939_v47, %v3909_v13 }
 0x2d7   : > { %v4213_v30 = vpack.c.b16 %v4197_v63, %v4197_v63  ;;  %v1539_v60 = vor.u32 %v1537_v26, %v1536_v59  ;;  %v1009_v6 = vsel %vm4141_vm0, %v1008_v53, %v1004_v3  ;;  %vm1017_vm9 = vweird.f32 %v4125_v12  ;;  %2078 = vmatpush.bf16.msra.mxu3 %v3183_v29 }
 0x2d8   : > { %v1280_v8 = vpack.c.b16 %v1273_v41, %v4032_v43  ;;  %v4229_v1 = vunpack.c.l.b16 %v4207_v27  ;;  %vm4231_vm10 = vmor %vm1016_vm8, %vm1017_vm9  ;;  %v1022_v47 = vand.u32 2147483648, %v4043_v17  ;;  %v4241_v24 = vadd.f32 %v3946_v57, %v865_v19 }
 0x2d9   : > { %v1541_v50 = vshrl.u32 %v4213_v30, 16  ;;  %v1597_v35 = vsel %vm3995_vm12, 0, %v1539_v60  ;;  %v1544_v43 = vshll.u32 %v4213_v30, 16  ;;  %v1019_v54 = vsel %vm4231_vm10, %v4125_v12, %v1015_v16 }
 0x2da   : > { %1344 = vmatmul.bf16.vlgmr.msrb.gmra.mxu2 %v1280_v8  ;;  %v1630_v49 = vunpack.c.l.b16 %v1597_v35  ;;  %vm1021_vm11 = vcmp.eq.f32.partialorder %v1020_v25, 8.507059e+37  ;;  %v1023_v46 = vor.u32 1.1754944e-38, %v1022_v47  ;;  %v1046_v17 = vmul.f32 %v1009_v6, %v3979_v14 }
 0x2db   : > { %v1543_v40 = vrot.slane %v1541_v50, 7  ;;  %v1072_v56 = vshrl.u32 %v4184_v18, 16  ;;  %v1075_v53 = vshll.u32 %v4184_v18, 16  ;;  %v1079_v12 = vshrl.u32 %v4207_v27, 16  ;;  %2079 = vmatpush.bf16.msra.mxu3 %v3182_v32 }
 0x2dc   : > { %v1082_v28 = vshll.u32 %v4207_v27, 16  ;;  %v1024_v37 = vsel %vm1021_vm11, %v1023_v46, %v1019_v54  ;;  %v4252_v2 = vpack.c.bf16 %v1046_v17, %v1046_v17  ;;  %v4256_v14 = vpack.c.b16 %v4229_v1, %v4229_v1  ;;  %v3173_v17 = vld [vmem:[#allocation7 + $0x168] sm:$0xff] }
 0x2dd   : > { %v1546_v57 = vor.u32 %v1544_v43, %v1543_v40  ;;  %v1047_v21 = vmul.f32 %v1024_v37, %v3984_v34  ;;  %v1074_v23 = vrot.slane %v1072_v56, 7  ;;  %v1081_v7 = vrot.slane %v1079_v12, 7  ;;  %1964 = vmatpush.bf16.msra.mxu2 %v3173_v17 }
 0x2de   : > { %v4265_v61 = vpack.c.b16 %v4160_v45, %v4160_v45  ;;  %v4270_v41 = vunpack.c.l.b16 %v4252_v2  ;;  %v4882_v3 = vshrl.u32 %v4256_v14, 16  ;;  %v2817_v34 = vmul.f32 -1.442695, %v4241_v24 }
 0x2df   : > { %v1598_v59 = vsel %vm3995_vm12, 0, %v1546_v57  ;;  %v4276_v29 = vpack.c.bf16 %v1047_v21, %v1047_v21  ;;  %v1077_v60 = vor.u32 %v1075_v53, %v1074_v23  ;;  %v1084_v6 = vor.u32 %v1082_v28, %v1081_v7  ;;  %v3181_v7 = vld [vmem:[#allocation7 + $0x1a8] sm:$0xff] }
 0x2e0   : > { %v4274_v16 = vunpack.c.l.b16 %v1598_v59  ;;  %v4284_v51 = vpack.c.b16 %v4229_v1, %v4197_v63  ;;  %v1550_v19 = vrot.slane %v4882_v3, 7  ;;  %v4889_v8 = vshll.u32 %v4256_v14, 16  ;;  %v3190_v59 = vld [vmem:[#allocation7 + $0x1f0] sm:$0xff]  ;;  %2080 = vmatpush.bf16.msra.mxu3 %v3181_v7  ;;  %v3171_v7 = vld [vmem:[#allocation7 + $0x158] sm:$0xff] }
 0x2e1   : > { %v4881_v25 = vshrl.u32 %v4265_v61, 16  ;;  %v4292_v13 = vunpack.c.l.b16 %v4276_v29  ;;  %v1126_v47 = vsel %vm3995_vm12, 0, %v1077_v60  ;;  %v1127_v54 = vsel %vm3995_vm12, 0, %v1084_v6  ;;  %v3198_v60 = vld [vmem:[#allocation7 + $0x230] sm:$0xff]  ;;  %2183 = vmatpush.bf16.msra.mxu0 %v3190_v59  ;;  %v3197_v59 = vld [vmem:[#allocation7 + $0x228] sm:$0xff] }
 0x2e2   : > { %v1638_v35 = vpack.c.b16 %v4274_v16, %v1630_v49  ;;  %v1553_v32 = vor.u32 %v4889_v8, %v1550_v19  ;;  %v1274_v62 = vunpack.c.l.b16 %v1126_v47  ;;  %v1275_v40 = vunpack.c.l.b16 %v1127_v54  ;;  %v3172_v19 = vld [vmem:[#allocation7 + $0x160] sm:$0xff]  ;;  %2294 = vmatpush.bf16.msra.mxu1 %v3198_v60 }
 0x2e3   : > { %1248 = vmatmul.bf16.gmra.mxu1 %v4284_v51  ;;  %v1557_v55 = vrot.slane %v4881_v25, 7  ;;  %v4305_v49 = vpack.c.b16 %v4292_v13, %v4270_v41  ;;  %v1367_v46 = vrot.slane %v1068_v39, 1  ;;  %v4885_v57 = vshll.u32 %v4265_v61, 16  ;;  %1965 = vmatpush.bf16.msra.mxu2 %v3172_v19 }
 0x2e4   : > { %1702 = vmatmul.bf16.vlgmr.msrb.gmra.mxu0 %v1638_v35  ;;  %v1599_v37 = vsel %vm3995_vm12, 0, %v1553_v32  ;;  %3349 = vpow2.f32 %v2817_v34  ;;  %v1086_v23 = vshrl.u32 %v4134_v42, 16  ;;  %v1093_v6 = vshrl.u32 %v4157_v44, 16  ;;  %v3189_v32 = vld [vmem:[#allocation7 + $0x1e8] sm:$0xff] }
 0x2e5   : > { %v4313_v21 = vunpack.c.l.b16 %v1599_v37  ;;  %v1560_v39 = vor.u32 %v4885_v57, %v1557_v55  ;;  %v1281_v35 = vpack.c.b16 %v1275_v40, %v1274_v62  ;;  %v1365_v47 = vrot.slane %v3556_v4, 1  ;;  %v3180_v40 = vld [vmem:[#allocation7 + $0x1a0] sm:$0xff]  ;;  %2184 = vmatpush.bf16.msra.mxu0 %v3189_v32 }
 0x2e6   : > { %1258 = vmatmul.bf16.gmra.mxu3 %v4305_v49  ;;  %v1368_v54 = vor.u32 %v1367_v46, %v1065_v38  ;;  %v1088_v17 = vrot.slane %v1086_v23, 7  ;;  %v1095_v55 = vrot.slane %v1093_v6, 7  ;;  %v4330_v62 = vpack.c.b16 %v4176_v58, %v4176_v58  ;;  %2295 = vmatpush.bf16.msra.mxu1 %v3197_v59 }
 0x2e7   : > { %v1600_v36 = vsel %vm3995_vm12, 0, %v1560_v39  ;;  %v1089_v38 = vshll.u32 %v4134_v42, 16  ;;  %v1096_v46 = vshll.u32 %v4157_v44, 16  ;;  %v4338_v37 = vpack.c.b16 %v4270_v41, %v4270_v41  ;;  %2081 = vmatpush.bf16.msra.mxu3 %v3180_v40  ;;  %v3188_v39 = vld [vmem:[#allocation7 + $0x1e0] sm:$0xff]  ;;  %1966 = vmatpush.bf16.msra.mxu2 %v3171_v7 }
 0x2e8   : > { %v1389_v60 = vsel %vm3756_vm2, %v1365_v47, 0  ;;  %v4884_v34 = vshrl.u32 %v4330_v62, 16  ;;  %v4349_v19 = vunpack.c.l.b16 %v1600_v36  ;;  %v1748_v32 = vpack.c.b16 %v4197_v63, %v4148_v48 }
 0x2e9   : > { %v1091_v10 = vor.u32 %v1089_v38, %v1088_v17  ;;  %v1098_v11 = vor.u32 %v1096_v46, %v1095_v55  ;;  %v1422_v47 = vunpack.c.l.b16 %v1389_v60  ;;  %2185 = vmatpush.bf16.msra.mxu0 %v3188_v39  ;;  %v1369_v36 = vrot.slane %v1075_v53, 1 }
 0x2ea   : > { %1349 = vmatmul.bf16.gmra.mxu2 %v1281_v35  ;;  %v3350_v4 = vpop.eup %3349  ;;  %v1390_v35 = vsel %vm3756_vm2, %v1368_v54, 0  ;;  %v4883_v54 = vshrl.u32 %v4338_v37, 16  ;;  %v1564_v40 = vrot.slane %v4884_v34, 7  ;;  %v4888_v48 = vshll.u32 %v4330_v62, 16 }
 0x2eb   : > { %v4351_v25 = vadd.f32 1.0, %v3350_v4  ;;  %v1423_v3 = vunpack.c.l.b16 %v1390_v35  ;;  %v1128_v17 = vsel %vm3995_vm12, 0, %v1091_v10  ;;  %v1129_v55 = vsel %vm3995_vm12, 0, %v1098_v11 }
 0x2ec   : > { %v1639_v4 = vpack.c.b16 %v4349_v19, %v4313_v21  ;;  %v1571_v10 = vrot.slane %v4883_v54, 7  ;;  %v1371_v11 = vrot.slane %v1082_v28, 1  ;;  %v1276_v63 = vunpack.c.l.b16 %v1128_v17  ;;  %v3187_v17 = vld [vmem:[#allocation7 + $0x1d8] sm:$0xff]  ;;  %v3196_v54 = vld [vmem:[#allocation7 + $0x220] sm:$0xff] }
 0x2ed   : > { %3351 = vrcp.f32 %v4351_v25  ;;  %v1430_v7 = vpack.c.b16 %v1423_v3, %v1422_v47  ;;  %v1277_v59 = vunpack.c.l.b16 %v1129_v55  ;;  %v1100_v60 = vshrl.u32 %v4252_v2, 16  ;;  %2186 = vmatpush.bf16.msra.mxu0 %v3187_v17  ;;  %2296 = vmatpush.bf16.msra.mxu1 %v3196_v54 }
 0x2ee   : > { %v4375_v53 = vpack.c.b16 %v4292_v13, %v4292_v13  ;;  %v1567_v3 = vor.u32 %v4888_v48, %v1564_v40  ;;  %v4886_v35 = vshll.u32 %v4338_v37, 16  ;;  %v4890_v39 = vshrl.u32 %v4276_v29, 16  ;;  %v3195_v48 = vld [vmem:[#allocation7 + $0x218] sm:$0xff] }
 0x2ef   : > { %v1370_v28 = vor.u32 %v1369_v36, %v1072_v56  ;;  %v1282_v57 = vpack.c.b16 %v1277_v59, %v1276_v63  ;;  %v1372_v40 = vor.u32 %v1371_v11, %v1079_v12  ;;  %v3169_v56 = vld [vmem:[#allocation7 + $0x148] sm:$0xff]  ;;  %v3186_v36 = vld [vmem:[#allocation7 + $0x1d0] sm:$0xff]  ;;  %v1103_v11 = vshll.u32 %v4252_v2, 16 }
 0x2f0   : > { %v4887_v47 = vshrl.u32 %v4375_v53, 16  ;;  %v1574_v55 = vor.u32 %v4886_v35, %v1571_v10  ;;  %v1601_v10 = vsel %vm3995_vm12, 0, %v1567_v3  ;;  %v1109_v35 = vrot.slane %v4890_v39, 7  ;;  %v3178_v59 = vld [vmem:[#allocation7 + $0x190] sm:$0xff] }
 0x2f1   : > { %v4891_v27 = vshll.u32 %v4375_v53, 16  ;;  %v1391_v12 = vsel %vm3756_vm2, %v1370_v28, 0  ;;  %v1110_v3 = vshll.u32 %v4276_v29, 16  ;;  %v4406_v8 = vunpack.c.l.b16 %v1601_v10  ;;  %2187 = vmatpush.bf16.msra.mxu0 %v3186_v36  ;;  %2297 = vmatpush.bf16.msra.mxu1 %v3195_v48 }
 0x2f2   : > { %v1578_v18 = vrot.slane %v4887_v47, 7  ;;  %v1037_v28 = vand.u32 2147483648, %v4351_v25  ;;  %vm1031_vm6 = vweird.f32 %v4351_v25  ;;  %v1424_v36 = vunpack.c.l.b16 %v1391_v12 }
 0x2f3   : > { %1812 = vmatmul.bf16.vlgmr.msrb.gmra.mxu1 %v1748_v32  ;;  %v3170_v32 = vld [vmem:[#allocation7 + $0x150] sm:$0xff]  ;;  %v3352_v34 = vpop.eup %3351  ;;  %v1750_v30 = vpack.c.b16 %v4270_v41, %v4176_v58  ;;  %v1379_v58 = vrot.slane %v1110_v3, 1  ;;  %v3192_v41 = vld [vmem:[#allocation7 + $0x200] sm:$0xff]  ;;  %vm4939_vm14 = vcmask 785408  }
 0x2f4   : > { %1707 = vmatmul.bf16.gmra.mxu0 %v1639_v4  ;;  %v3179_v4 = vld [vmem:[#allocation7 + $0x198] sm:$0xff]  ;;  %1967 = vmatpush.bf16.msra.mxu2 %v3170_v32  ;;  %v1027_v63 = vmul.f32 %v3352_v34, %v4351_v25  ;;  %v1602_v32 = vsel %vm3995_vm12, 0, %v1574_v55  ;;  %v1581_v47 = vor.u32 %v4891_v27, %v1578_v18  ;;  %v3168_v55 = vld [vmem:[#allocation7 + $0x140] sm:$0xff]  ;;  %vm1032_vm13 = vweird.f32 %v3352_v34  ;;  %vm4942_vm8 = vmmov %vm4939_vm14 }
 0x2f5   : > { %2082 = vmatpush.bf16.msra.mxu3 %v3179_v4  ;;  %v3185_v4 = vld [vmem:[#allocation7 + $0x1c8] sm:$0xff]  ;;  %v1035_v18 = vand.u32 2147483647, %v4351_v25  ;;  %v4416_v10 = vunpack.c.l.b16 %v1602_v32  ;;  %vm1033_vm4 = vmor %vm1031_vm6, %vm1032_vm13 }
 0x2f6   : > { %1494 = vmatmul.bf16.vlgmr.msrb.gmra.mxu3 %v1430_v7  ;;  %v1102_v7 = vrot.slane %v1100_v60, 7  ;;  %v1028_v17 = vsub.f32 1.0, %v1027_v63  ;;  %v1112_v63 = vor.u32 %v1110_v3, %v1109_v35  ;;  %2188 = vmatpush.bf16.msra.mxu0 %v3185_v4  ;;  %v3177_v4 = vld [vmem:[#allocation7 + $0x188] sm:$0xff]  ;;  %vm4945_vm11 = vmmov %vm4942_vm8 }
 0x2f7   : > { %vm1036_vm3 = vcmp.eq.f32.partialorder %v1035_v18, 8.507059e+37  ;;  %v1640_v25 = vpack.c.b16 %v4416_v10, %v4406_v8 }
 0x2f8   : > { %v1105_v54 = vor.u32 %v1103_v11, %v1102_v7  ;;  %1968 = vmatpush.bf16.msra.mxu2 %v3169_v56  ;;  %v1029_v39 = vmul.f32 %v3352_v34, %v1028_v17  ;;  %v1603_v56 = vsel %vm3995_vm12, 0, %v1581_v47  ;;  %v1038_v17 = vor.u32 1.1754944e-38, %v1037_v28 }
 0x2f9   : > { %2083 = vmatpush.bf16.msra.mxu3 %v3178_v59  ;;  %v1131_v48 = vsel %vm3995_vm12, 0, %v1112_v63  ;;  %v4431_v47 = vunpack.c.l.b16 %v1603_v56  ;;  %v3194_v63 = vld [vmem:[#allocation7 + $0x210] sm:$0xff] }
 0x2fa   : > { %1354 = vmatmul.bf16.gmra.mxu2 %v1282_v57  ;;  %v1392_v57 = vsel %vm3756_vm2, %v1372_v40, 0  ;;  %v1749_v40 = vpack.c.b16 %v4160_v45, %v4229_v1  ;;  %v1030_v7 = vadd.f32 %v3352_v34, %v1029_v39  ;;  %v1130_v35 = vsel %vm3995_vm12, 0, %v1105_v54  ;;  %v3184_v45 = vld [vmem:[#allocation7 + $0x1c0] sm:$0xff]  ;;  %2298 = vmatpush.bf16.msra.mxu1 %v3194_v63 }
 0x2fb   : > { %v1425_v27 = vunpack.c.l.b16 %v1392_v57  ;;  %v2023_v1 = vpack.c.b16 %v4406_v8, %v4349_v19  ;;  %v1278_v57 = vunpack.c.l.b16 %v1130_v35  ;;  %v1279_v54 = vunpack.c.l.b16 %v1131_v48  ;;  %2189 = vmatpush.bf16.msra.mxu0 %v3184_v45  ;;  %v3193_v35 = vld [vmem:[#allocation7 + $0x208] sm:$0xff] }
 0x2fc   : > { %1969 = vmatpush.bf16.msra.mxu2 %v3168_v55  ;;  %v1034_v59 = vsel %vm1033_vm4, %v3352_v34, %v1030_v7  ;;  %v1373_v34 = vrot.slane %v1089_v38, 1  ;;  %v1375_v55 = vrot.slane %v1096_v46, 1  ;;  %v2024_v18 = vpack.c.b16 %v4431_v47, %v4416_v10 }
 0x2fd   : > { %v1039_v39 = vsel %vm1036_vm3, %v1038_v17, %v1034_v59  ;;  %v1431_v32 = vpack.c.b16 %v1425_v27, %v1424_v36  ;;  %v1843_v27 = vrot.slane %v1544_v43, 1  ;;  %v1283_v7 = vpack.c.b16 %v1279_v54, %v1278_v57  ;;  %2084 = vmatpush.bf16.msra.mxu3 %v3177_v4  ;;  %v3176_v36 = vld [vmem:[#allocation7 + $0x180] sm:$0xff] }
 0x2fe   : > { %v1048_v12 = vmul.f32 %v1039_v39, %v4241_v24  ;;  %v1841_v24 = vrot.slane %v1537_v26, 1  ;;  %v1374_v46 = vor.u32 %v1373_v34, %v1086_v23  ;;  %v1376_v56 = vor.u32 %v1375_v55, %v1093_v6  ;;  %2299 = vmatpush.bf16.msra.mxu1 %v3193_v35 }
 0x2ff   : > { %v1844_v17 = vor.u32 %v1843_v27, %v1541_v50  ;;  %v1377_v54 = vrot.slane %v1103_v11, 1  ;;  %v4923_v55 = vshrl.u32 %v4276_v29, 16  ;;  %v4924_v63 = vshll.u32 %v4256_v14, 16 }
 0x300   : > { %v1056_v28 = vpack.c.bf16 %v1048_v12, %v1048_v12  ;;  %v1842_v43 = vor.u32 %v1841_v24, %v1534_v31  ;;  %v1393_v44 = vsel %vm3756_vm2, %v1374_v46, 0  ;;  %v1394_v6 = vsel %vm3756_vm2, %v1376_v56, 0 }
 0x301   : > { %2085 = vmatpush.bf16.msra.mxu3 %v3176_v36  ;;  %v1426_v59 = vunpack.c.l.b16 %v1393_v44  ;;  %v1427_v52 = vunpack.c.l.b16 %v1394_v6  ;;  %v1866_v45 = vsel %vm3756_vm2, %v1844_v17, 0  ;;  %v1378_v34 = vor.u32 %v1377_v54, %v1100_v60 }
 0x302   : > { %v1865_v50 = vsel %vm3756_vm2, %v1842_v43, 0  ;;  %v1899_v57 = vunpack.c.l.b16 %v1866_v45  ;;  %2300 = vmatpush.bf16.msra.mxu1 %v3192_v41  ;;  %v1380_v4 = vor.u32 %v1379_v58, %v4923_v55  ;;  %v1845_v24 = vrot.slane %v4924_v63, 1 }
 0x303   : > { %1817 = vmatmul.bf16.gmra.mxu1 %v1749_v40  ;;  %v4440_v40 = vunpack.c.l.b16 %v1056_v28  ;;  %v1432_v12 = vpack.c.b16 %v1427_v52, %v1426_v59  ;;  %v4925_v27 = vshll.u32 %v4265_v61, 16  ;;  %v1395_v3 = vsel %vm3756_vm2, %v1378_v34, 0 }
 0x304   : > { %1712 = vmatmul.bf16.gmra.mxu0 %v1640_v25  ;;  %v4926_v46 = vshrl.u32 %v4256_v14, 16  ;;  %v4927_v60 = vshrl.u32 %v4265_v61, 16  ;;  %v1428_v56 = vunpack.c.l.b16 %v1395_v3  ;;  %v3316_v14 = vld [vmem:[%s4870_s6] ss:$0 sm:$0xff]  ;;  %v4929_v59 = vshll.u32 %v4338_v37, 16 }
 0x305   : > { %v4448_v38 = vpack.c.b16 %v4440_v40, %v4440_v40  ;;  %v1847_v11 = vrot.slane %v4925_v27, 1  ;;  %v1751_v35 = vpack.c.b16 %v4440_v40, %v4292_v13  ;;  %2333 = vrot.lane.b32.xlu0 %v3316_v14, %s3554_s15  ;;  %2336 = vrot.lane.b32.xlu1 %v3316_v14, %s3553_s1  ;;  %v4928_v13 = vshll.u32 %v4330_v62, 16 }
 0x306   : > { %1499 = vmatmul.bf16.gmra.mxu3 %v1431_v32  ;;  %v1898_v32 = vunpack.c.l.b16 %v1865_v50  ;;  %v1846_v2 = vor.u32 %v1845_v24, %v4926_v46  ;;  %v1851_v52 = vrot.slane %v4929_v59, 1  ;;  %2339 = vrot.lane.b32.xlu2 %v3316_v14, %s3555_s20  ;;  %v4932_v58 = vpack.c.b16 %v4313_v21, %v4274_v16 }
 0x307   : > { %v1583_v26 = vshrl.u32 %v4448_v38, 16  ;;  %v1586_v23 = vshll.u32 %v4448_v38, 16  ;;  %v1848_v29 = vor.u32 %v1847_v11, %v4927_v60  ;;  %v1999_v24 = vrot.slane %v4935_v22, 7 }
 0x308   : > { %v1906_v28 = vpack.c.b16 %v1899_v57, %v1898_v32  ;;  %v1867_v43 = vsel %vm3756_vm2, %v1846_v2, 0  ;;  %v4936_v8 = vshll.u32 %v3807_v9, 16 }
 0x309   : > { %v1585_v42 = vrot.slane %v1583_v26, 7  ;;  %v1868_v17 = vsel %vm3756_vm2, %v1848_v29, 0  ;;  %v1900_v44 = vunpack.c.l.b16 %v1867_v43 }
 0x30a   : > { %1359 = vmatmul.bf16.gmra.mxu2 %v1283_v7  ;;  %v1396_v7 = vsel %vm3756_vm2, %v1380_v4, 0  ;;  %v1901_v6 = vunpack.c.l.b16 %v1868_v17  ;;  %v2000_v19 = vor.u32 %v1999_v24, %v4936_v8 }
 0x30b   : > { %v1588_v48 = vor.u32 %v1586_v23, %v1585_v42  ;;  %v1429_v36 = vunpack.c.l.b16 %v1396_v7  ;;  %v2237_v45 = vpack.c.b16 %v1900_v44, %v1899_v57  ;;  %v1855_v57 = vrot.slane %v1586_v23, 1 }
 0x30c   : > { %v1907_v61 = vpack.c.b16 %v1901_v6, %v1900_v44  ;;  %v2132_v23 = vpack.c.b16 %v3799_v5, %v4440_v40  ;;  %v2002_v3 = vsel %vm3995_vm12, 0, %v2000_v19 }
 0x30d   : > { %v1604_v31 = vsel %vm3995_vm12, 0, %v1588_v48  ;;  %v1433_v42 = vpack.c.b16 %v1429_v36, %v1428_v56  ;;  %v1849_v48 = vrot.slane %v4928_v13, 1  ;;  %v1856_v55 = vor.u32 %v1855_v57, %v1583_v26 }
 0x30e   : > { %v4474_v25 = vunpack.c.l.b16 %v1604_v31  ;;  %v2021_v7 = vunpack.c.l.b16 %v2002_v3  ;;  %vm4938_vm12 = vcmask 523264  }
 0x30f   : > { %v1872_v16 = vsel %vm3756_vm2, %v1856_v55, 0  ;;  %vm4941_vm5 = vmmov %vm4938_vm12 }
 0x310   : > { %v1641_v39 = vpack.c.b16 %v4474_v25, %v4431_v47  ;;  %v1905_v63 = vunpack.c.l.b16 %v1872_v16  ;;  %v2025_v10 = vpack.c.b16 %v2021_v7, %v4474_v25  ;;  %vm4944_vm10 = vmmov %vm4941_vm5 }
 0x313   : > { %1822 = vmatmul.bf16.gmra.mxu1 %v1750_v30  ;;  %v4931_v30 = vshrl.u32 %v4338_v37, 16  ;;  %v4933_v37 = vshll.u32 %v4375_v53, 16 }
 0x314   : > { %1717 = vmatmul.bf16.gmra.mxu0 %v1641_v39 }
 0x315   : > { %v1852_v50 = vor.u32 %v1851_v52, %v4931_v30  ;;  %v1853_v41 = vrot.slane %v4933_v37, 1 }
 0x316   : > { %1504 = vmatmul.bf16.gmra.mxu3 %v1432_v12 }
 0x317   : > { %v1870_v12 = vsel %vm3756_vm2, %v1852_v50, 0 }
 0x318   : > { %v1903_v54 = vunpack.c.l.b16 %v1870_v12 }
 0x31a   : > { %1970 = vmatmul.bf16.vlgmr.msra.gmra.mxu2 %v1906_v28  ;;  %v4934_v28 = vshrl.u32 %v4375_v53, 16 }
 0x31c   : > { %v1854_v34 = vor.u32 %v1853_v41, %v4934_v28 }
 0x323   : > { %1827 = vmatmul.bf16.gmra.mxu1 %v1751_v35 }
 0x324   : > { %2190 = vmatmul.bf16.vlgmr.msra.gmra.mxu0 %v4284_v51  ;;  %v4930_v51 = vshrl.u32 %v4330_v62, 16 }
 0x326   : > { %1509 = vmatmul.bf16.gmra.mxu3 %v1433_v42  ;;  %v1850_v31 = vor.u32 %v1849_v48, %v4930_v51 }
 0x328   : > { %v1869_v39 = vsel %vm3756_vm2, %v1850_v31, 0 }
 0x329   : > { %v1902_v32 = vunpack.c.l.b16 %v1869_v39 }
 0x32a   : > { %1975 = vmatmul.bf16.gmra.mxu2 %v1907_v61 }
 0x32b   : > { %v1908_v62 = vpack.c.b16 %v1903_v54, %v1902_v32  ;;  %v2238_v4 = vpack.c.b16 %v1902_v32, %v1901_v6 }
 0x333   : > { %2301 = vmatmul.bf16.vlgmr.msra.gmra.mxu1 %v2237_v45 }
 0x334   : > { %2195 = vmatmul.bf16.gmra.mxu0 %v4189_v20  ;;  %v1871_v20 = vsel %vm3756_vm2, %v1854_v34, 0  ;;  %vm4937_vm2 = vcmask 261120  }
 0x335   : > { %v1904_v21 = vunpack.c.l.b16 %v1871_v20  ;;  %vm4940_vm7 = vmmov %vm4937_vm2 }
 0x336   : > { %2086 = vmatmul.bf16.vlgmr.msra.gmra.mxu3 %v4932_v58  ;;  %vm4943_vm9 = vmmov %vm4937_vm2 }
 0x337   : > { %v1909_v53 = vpack.c.b16 %v1905_v63, %v1904_v21  ;;  %v2239_v26 = vpack.c.b16 %v1904_v21, %v1903_v54 }
 0x33a   : > { %1980 = vmatmul.bf16.gmra.mxu2 %v1908_v62 }
 0x343   : > { %2306 = vmatmul.bf16.gmra.mxu1 %v2238_v4 }
 0x344   : > { %2200 = vmatmul.bf16.gmra.mxu0 %v4305_v49 }
 0x346   : > { %2091 = vmatmul.bf16.gmra.mxu3 %v2023_v1  ;;  %v2236_v1 = vunpack.c.l.b16 %v3822_v15 }
 0x348   : > { %v2240_v60 = vpack.c.b16 %v2236_v1, %v1905_v63 }
 0x34a   : > { %1985 = vmatmul.bf16.gmra.mxu2 %v1909_v53 }
 0x350   : > { %v1244_v38 = vpop.f32.mrf.mxu1 }
 0x353   : > { %2311 = vmatmul.bf16.gmra.mxu1 %v2239_v26 }
 0x354   : > { %2205 = vmatmul.bf16.gmra.mxu0 %v2132_v23 }
 0x356   : > { %2096 = vmatmul.bf16.gmra.mxu3 %v2024_v18 }
 0x358   : > { %v1246_v49 = vpop.f32.mrf.mxu1 }
 0x359   : > { %v1254_v27 = vpop.f32.mrf.mxu3 }
 0x35d   : > { %v1345_v11 = vpop.f32.mrf.mxu2 }
 0x35e   : > { %v1346_v5 = vadd.f32 %v1345_v11, %v1244_v38 }
 0x360   : > { %v1249_v40 = vpop.f32.mrf.mxu1 }
 0x361   : > { %v1703_v46 = vpop.f32.mrf.mxu0  ;;  %v1256_v2 = vpop.f32.mrf.mxu3 }
 0x363   : > { %2316 = vmatmul.bf16.gmra.mxu1 %v2240_v60 }
 0x365   : > { %v1347_v47 = vpop.f32.mrf.mxu2 }
 0x366   : > { %2101 = vmatmul.bf16.gmra.mxu3 %v2025_v10  ;;  %v1348_v18 = vadd.f32 %v1347_v47, %v1246_v49 }
 0x368   : > { %v1251_v9 = vpop.f32.mrf.mxu1 }
 0x369   : > { %v1705_v29 = vpop.f32.mrf.mxu0  ;;  %v4554_v56 = vpop.f32.mrf.mxu3 }
 0x36d   : > { %v1350_v15 = vpop.f32.mrf.mxu2 }
 0x36e   : > { %v1351_v36 = vadd.f32 %v1350_v15, %v1249_v40 }
 0x370   : > { %v1813_v33 = vpop.f32.mrf.mxu1 }
 0x371   : > { %v1708_v35 = vpop.f32.mrf.mxu0  ;;  %v4556_v43 = vpop.f32.mrf.mxu3 }
 0x375   : > { %v1352_v17 = vpop.f32.mrf.mxu2 }
 0x376   : > { %v1353_v42 = vadd.f32 %v1352_v17, %v1251_v9 }
 0x378   : > { %v1815_v44 = vpop.f32.mrf.mxu1 }
 0x379   : > { %v1495_v6 = vpop.f32.mrf.mxu3  ;;  %v1710_v61 = vpop.f32.mrf.mxu0 }
 0x37a   : > { %v1515_v14 = vadd.f32 %v1495_v6, %v1346_v5 }
 0x37c   : > { %v1723_v25 = vadd.f32 %v1703_v46, %v1515_v14  ;;  %v2334_v14 = vpop.permute.xlu0 %2333 }
 0x37d   : > { %v1355_v13 = vpop.f32.mrf.mxu2 }
 0x37e   : > { %v1356_v48 = vadd.f32 %v1355_v13, %v1254_v27  ;;  %v1833_v31 = vadd.f32 %v1813_v33, %v1723_v25 }
 0x380   : > { %v1818_v59 = vpop.f32.mrf.mxu1 }
 0x381   : > { %v1497_v52 = vpop.f32.mrf.mxu3  ;;  %v1713_v50 = vpop.f32.mrf.mxu0 }
 0x382   : > { %v1516_v51 = vadd.f32 %v1497_v52, %v1348_v18 }
 0x384   : > { %v1724_v30 = vadd.f32 %v1705_v29, %v1516_v51 }
 0x385   : > { %v1357_v45 = vpop.f32.mrf.mxu2 }
 0x386   : > { %v1358_v39 = vadd.f32 %v1357_v45, %v1256_v2  ;;  %v1834_v58 = vadd.f32 %v1815_v44, %v1724_v30  ;;  %v2337_v45 = vpop.permute.xlu1 %2336 }
 0x388   : > { %v1820_v12 = vpop.f32.mrf.mxu1 }
 0x389   : > { %v1500_v32 = vpop.f32.mrf.mxu3  ;;  %v1715_v37 = vpop.f32.mrf.mxu0 }
 0x38a   : > { %v1517_v54 = vadd.f32 %v1500_v32, %v1351_v36 }
 0x38c   : > { %v1725_v62 = vadd.f32 %v1708_v35, %v1517_v54 }
 0x38d   : > { %v1360_v34 = vpop.f32.mrf.mxu2 }
 0x38e   : > { %v1835_v55 = vadd.f32 %v1818_v59, %v1725_v62  ;;  %v1361_v30 = vadd.f32 %v1360_v34, %v4554_v56 }
 0x390   : > { %v1823_v41 = vpop.f32.mrf.mxu1 }
 0x391   : > { %v1502_v57 = vpop.f32.mrf.mxu3  ;;  %v1718_v16 = vpop.f32.mrf.mxu0 }
 0x392   : > { %v1518_v28 = vadd.f32 %v1502_v57, %v1353_v42 }
 0x394   : > { %v1726_v4 = vadd.f32 %v1710_v61, %v1518_v28  ;;  %v2330_v61 = vld [vmem:[%s4870_s6] sm:$0x1] }
 0x395   : > { %v1362_v26 = vpop.f32.mrf.mxu2 }
 0x396   : > { %v1836_v53 = vadd.f32 %v1820_v12, %v1726_v4 }
 0x398   : > { %v1825_v20 = vpop.f32.mrf.mxu1 }
 0x399   : > { %v1505_v21 = vpop.f32.mrf.mxu3  ;;  %v4560_v49 = vpop.f32.mrf.mxu0 }
 0x39a   : > { %v1519_v63 = vadd.f32 %v1505_v21, %v1356_v48 }
 0x39c   : > { %v1727_v38 = vadd.f32 %v1713_v50, %v1519_v63  ;;  %v2342_v50 = vsel %vm4937_vm2, %v2330_v61, %v2334_v14 }
 0x39d   : > { %v1971_v19 = vpop.f32.mrf.mxu2  ;;  %v2343_v62 = vsel %vm4938_vm12, %v2342_v50, %v2337_v45 }
 0x39e   : > { %v1837_v27 = vadd.f32 %v1823_v41, %v1727_v38  ;;  %v1991_v59 = vadd.f32 %v1971_v19, %v1833_v31 }
 0x3a0   : > { %v4558_v23 = vpop.f32.mrf.mxu1 }
 0x3a1   : > { %v1507_v22 = vpop.f32.mrf.mxu3  ;;  %v2191_v5 = vpop.f32.mrf.mxu0 }
 0x3a2   : > { %v1520_v24 = vadd.f32 %v1507_v22, %v1358_v39 }
 0x3a4   : > { %v1728_v8 = vadd.f32 %v1715_v37, %v1520_v24  ;;  %v2340_v37 = vpop.permute.xlu2 %2339 }
 0x3a5   : > { %v1973_v7 = vpop.f32.mrf.mxu2  ;;  %v2344_v56 = vsel %vm4939_vm14, %v2343_v62, %v2340_v37 }
 0x3a6   : > { %v1838_v3 = vadd.f32 %v1825_v20, %v1728_v8  ;;  %v1992_v25 = vadd.f32 %v1973_v7, %v1834_v58 }
 0x3a8   : > { %v4562_v1 = vpop.f32.mrf.mxu1 }
 0x3a9   : > { %v1510_v11 = vpop.f32.mrf.mxu3  ;;  %v2193_v2 = vpop.f32.mrf.mxu0 }
 0x3aa   : > { %v1521_v32 = vadd.f32 %v1510_v11, %v1361_v30  ;;  %v2345_v11 = vperm.slane %v2344_v56, 0 }
 0x3ac   : > { %v1729_v21 = vadd.f32 %v1718_v16, %v1521_v32 }
 0x3ad   : > { %v1976_v47 = vpop.f32.mrf.mxu2 }
 0x3ae   : > { %v1993_v52 = vadd.f32 %v1976_v47, %v1835_v55 }
 0x3b0   : > { %v2302_v40 = vpop.f32.mrf.mxu1 }
 0x3b1   : > { %v1512_v46 = vpop.f32.mrf.mxu3  ;;  %v2196_v18 = vpop.f32.mrf.mxu0 }
 0x3b5   : > { %v1978_v15 = vpop.f32.mrf.mxu2 }
 0x3b6   : > { %v1994_v54 = vadd.f32 %v1978_v15, %v1836_v53  ;;  %v1363_v53 = vadd.f32 %v1362_v26, %v4556_v43 }
 0x3b8   : > { %v2304_v10 = vpop.f32.mrf.mxu1 }
 0x3b9   : > { %v2087_v60 = vpop.f32.mrf.mxu3  ;;  %v2198_v33 = vpop.f32.mrf.mxu0 }
 0x3ba   : > { %v2107_v39 = vadd.f32 %v2087_v60, %v1991_v59 }
 0x3bc   : > { %v2211_v4 = vadd.f32 %v2191_v5, %v2107_v39  ;;  %v1839_v5 = vadd.f32 %v4558_v23, %v1729_v21 }
 0x3bd   : > { %v1981_v17 = vpop.f32.mrf.mxu2 }
 0x3be   : > { %v1995_v58 = vadd.f32 %v1981_v17, %v1837_v27  ;;  %v2322_v19 = vadd.f32 %v2302_v40, %v2211_v4  ;;  %v1522_v27 = vadd.f32 %v1512_v46, %v1363_v53 }
 0x3c0   : > { %v2307_v29 = vpop.f32.mrf.mxu1  ;;  %v1730_v26 = vadd.f32 %v4560_v49, %v1522_v27 }
 0x3c1   : > { %v2089_v9 = vpop.f32.mrf.mxu3  ;;  %v2201_v44 = vpop.f32.mrf.mxu0 }
 0x3c2   : > { %v2108_v51 = vadd.f32 %v2089_v9, %v1992_v25 }
 0x3c4   : > { %v2212_v41 = vadd.f32 %v2193_v2, %v2108_v51 }
 0x3c5   : > { %v1983_v13 = vpop.f32.mrf.mxu2 }
 0x3c6   : > { %v1996_v34 = vadd.f32 %v1983_v13, %v1838_v3  ;;  %v2323_v38 = vadd.f32 %v2304_v10, %v2212_v41  ;;  %v4575_v3 = vadd.f32 %v2345_v11, %v2322_v19 }
 0x3c8   : > { %v2309_v35 = vpop.f32.mrf.mxu1  ;;  %v4573_v60 = vadd.f32 %v2345_v11, %v2323_v38 }
 0x3c9   : > { %v2092_v36 = vpop.f32.mrf.mxu3  ;;  %v2203_v57 = vpop.f32.mrf.mxu0 }
 0x3ca   : > { %v2109_v12 = vadd.f32 %v2092_v36, %v1993_v52  ;;  %v2368_v46 = vmul.f32 %v4573_v60, %v4573_v60  ;;  %v2354_v49 = vadd.f32 %v4573_v60, %v4575_v3 }
 0x3cc   : > { %v2213_v31 = vadd.f32 %v2196_v18, %v2109_v12 }
 0x3cd   : > { %v1986_v22 = vpop.f32.mrf.mxu2 }
 0x3ce   : > { %v2324_v7 = vadd.f32 %v2307_v29, %v2213_v31  ;;  %v1997_v16 = vadd.f32 %v1986_v22, %v1839_v5 }
 0x3d0   : > { %v2312_v6 = vpop.f32.mrf.mxu1  ;;  %v4577_v10 = vadd.f32 %v2345_v11, %v2324_v7 }
 0x3d1   : > { %v2094_v42 = vpop.f32.mrf.mxu3  ;;  %v2206_v9 = vpop.f32.mrf.mxu0 }
 0x3d2   : > { %v2110_v28 = vadd.f32 %v2094_v42, %v1994_v54  ;;  %v2369_v17 = vmul.f32 %v4577_v10, %v4577_v10  ;;  %v2355_v25 = vadd.f32 %v2354_v49, %v4577_v10 }
 0x3d4   : > { %v2214_v24 = vadd.f32 %v2198_v33, %v2110_v28 }
 0x3d5   : > { %v1988_v42 = vpop.f32.mrf.mxu2 }
 0x3d6   : > { %v2325_v47 = vadd.f32 %v2309_v35, %v2214_v24  ;;  %v2367_v35 = vmul.f32 %v4575_v3, %v4575_v3 }
 0x3d8   : > { %v2314_v55 = vpop.f32.mrf.mxu1  ;;  %v4582_v29 = vadd.f32 %v2345_v11, %v2325_v47  ;;  %v2375_v61 = vadd.f32 %v2368_v46, %v2367_v35 }
 0x3d9   : > { %v2097_v48 = vpop.f32.mrf.mxu3  ;;  %v2208_v39 = vpop.f32.mrf.mxu0 }
 0x3da   : > { %v2111_v63 = vadd.f32 %v2097_v48, %v1995_v58  ;;  %v2370_v13 = vmul.f32 %v4582_v29, %v4582_v29  ;;  %v2376_v52 = vadd.f32 %v2375_v61, %v2369_v17  ;;  %v2356_v30 = vadd.f32 %v2355_v25, %v4582_v29 }
 0x3dc   : > { %v2215_v2 = vadd.f32 %v2201_v44, %v2111_v63  ;;  %v1840_v44 = vadd.f32 %v4562_v1, %v1730_v26  ;;  %v2377_v12 = vadd.f32 %v2376_v52, %v2370_v13 }
 0x3de   : > { %v2326_v40 = vadd.f32 %v2312_v6, %v2215_v2  ;;  %v1998_v48 = vadd.f32 %v1988_v42, %v1840_v44 }
 0x3e0   : > { %v2317_v23 = vpop.f32.mrf.mxu1  ;;  %v4591_v6 = vadd.f32 %v2345_v11, %v2326_v40 }
 0x3e1   : > { %v2099_v20 = vpop.f32.mrf.mxu3 }
 0x3e2   : > { %v2112_v8 = vadd.f32 %v2099_v20, %v1996_v34  ;;  %v2371_v50 = vmul.f32 %v4591_v6, %v4591_v6  ;;  %v2357_v32 = vadd.f32 %v2356_v30, %v4591_v6 }
 0x3e4   : > { %v2216_v18 = vadd.f32 %v2203_v57, %v2112_v8  ;;  %v2378_v41 = vadd.f32 %v2377_v12, %v2371_v50  ;;  %v2415_v12 = vld [vmem:[%s4872_s8] sm:$0x1] }
 0x3e6   : > { %v2327_v36 = vadd.f32 %v2314_v55, %v2216_v18 }
 0x3e8   : > { %v4596_v59 = vadd.f32 %v2345_v11, %v2327_v36  ;;  %v2319_v37 = vpop.f32.mrf.mxu1 }
 0x3e9   : > { %v2102_v43 = vpop.f32.mrf.mxu3 }
 0x3ea   : > { %v2113_v15 = vadd.f32 %v2102_v43, %v1997_v16  ;;  %v2372_v54 = vmul.f32 %v4596_v59, %v4596_v59  ;;  %v2358_v57 = vadd.f32 %v2357_v32, %v4596_v59 }
 0x3ec   : > { %v2217_v33 = vadd.f32 %v2206_v9, %v2113_v15  ;;  %v2379_v4 = vadd.f32 %v2378_v41, %v2372_v54 }
 0x3ee   : > { %v2328_v14 = vadd.f32 %v2317_v23, %v2217_v33 }
 0x3f0   : > { %v4601_v1 = vadd.f32 %v2345_v11, %v2328_v14 }
 0x3f1   : > { %v2104_v51 = vpop.f32.mrf.mxu3 }
 0x3f2   : > { %v2114_v45 = vadd.f32 %v2104_v51, %v1998_v48  ;;  %v2373_v58 = vmul.f32 %v4601_v1, %v4601_v1  ;;  %v2359_v31 = vadd.f32 %v2358_v57, %v4601_v1  ;;  %v2414_v51 = vld [vmem:[%s4871_s7] sm:$0x1] }
 0x3f4   : > { %v2218_v62 = vadd.f32 %v2208_v39, %v2114_v45  ;;  %v2380_v20 = vadd.f32 %v2379_v4, %v2373_v58 }
 0x3f6   : > { %v2329_v28 = vadd.f32 %v2319_v37, %v2218_v62 }
 0x3f8   : > { %v4610_v55 = vadd.f32 %v2345_v11, %v2329_v28 }
 0x3fa   : > { %v2360_v21 = vadd.f32 %v2359_v31, %v4610_v55  ;;  %v2374_v56 = vmul.f32 %v4610_v55, %v4610_v55 }
 0x3fc   : > { %v2361_v34 = vrot.slane %v2360_v21, 4  ;;  %v2381_v63 = vadd.f32 %v2380_v20, %v2374_v56 }
 0x3fe   : > { %v2362_v38 = vadd.f32 %v2361_v34, %v2360_v21  ;;  %v2382_v22 = vrot.slane %v2381_v63, 4 }
 0x400   : > { %v2363_v53 = vrot.slane %v2362_v38, 2  ;;  %v2383_v24 = vadd.f32 %v2382_v22, %v2381_v63 }
 0x402   : > { %v2364_v8 = vadd.f32 %v2363_v53, %v2362_v38  ;;  %v2384_v19 = vrot.slane %v2383_v24, 2 }
 0x404   : > { %v2365_v7 = vrot.slane %v2364_v8, 1  ;;  %v2385_v27 = vadd.f32 %v2384_v19, %v2383_v24 }
 0x406   : > { %v2366_v5 = vadd.f32 %v2365_v7, %v2364_v8  ;;  %v2386_v2 = vrot.slane %v2385_v27, 1 }
 0x408   : > { %2393 = vrot.lane.b32.xlu1 %v2366_v5, %s3553_s1  ;;  %2389 = vrot.lane.b32.xlu0 %v2366_v5, %s3555_s20  ;;  %v2387_v11 = vadd.f32 %v2386_v2, %v2385_v27 }
 0x40a   : > { %2402 = vrot.lane.b32.xlu2 %v2387_v11, %s3555_s20 }
 0x410   : > { %2406 = vrot.lane.b32.xlu1 %v2387_v11, %s3553_s1  ;;  %2397 = vrot.lane.b32.xlu0 %v2366_v5, %s3554_s15 }
 0x412   : > { %2410 = vrot.lane.b32.xlu2 %v2387_v11, %s3554_s15 }
 0x464   : > { %v2403_v16 = vpop.permute.xlu2 %2402 }
 0x465   : > { %v2405_v43 = vadd.f32 %v2403_v16, %v2387_v11 }
 0x46c   : > { %v2411_v36 = vpop.permute.xlu2 %2410 }
 0x47a   : > { %v2394_v47 = vpop.permute.xlu1 %2393  ;;  %v2390_v18 = vpop.permute.xlu0 %2389 }
 0x47b   : > { %v2392_v9 = vadd.f32 %v2390_v18, %v2366_v5 }
 0x47d   : > { %v2396_v26 = vadd.f32 %v2394_v47, %v2392_v9 }
 0x482   : > { %v2407_v40 = vpop.permute.xlu1 %2406  ;;  %v2398_v15 = vpop.permute.xlu0 %2397 }
 0x483   : > { %v2409_v46 = vadd.f32 %v2407_v40, %v2405_v43  ;;  %v2400_v23 = vadd.f32 %v2398_v15, %v2396_v26 }
 0x485   : > { %v2413_v33 = vadd.f32 %v2411_v36, %v2409_v46  ;;  %v2416_v35 = vmul.f32 %v2400_v23, %v3920_v0 }
 0x487   : > { %v2417_v17 = vmul.f32 %v2413_v33, %v3920_v0  ;;  %v2418_v42 = vmul.f32 %v2416_v35, %v2416_v35 }
 0x489   : > { %v2419_v49 = vsub.f32 %v2417_v17, %v2418_v42 }
 0x48b   : > { %v2420_v44 = vmax.f32 %v2419_v49, 0.0 }
 0x48d   : > { %v2421_v14 = vadd.f32 1e-06, %v2420_v44 }
 0x48f   : > { %3353 = vrsqrt.f32 %v2421_v14  ;;  %vm2428_vm0 = vweird.f32 %v2421_v14 }
 0x495   : > { %v3354_v61 = vpop.eup %3353 }
 0x496   : > { %v2423_v25 = vmul.f32 %v3354_v61, %v2421_v14  ;;  %vm2429_vm15 = vweird.f32 %v3354_v61 }
 0x497   : > { %vm2430_vm1 = vmor %vm2428_vm0, %vm2429_vm15 }
 0x498   : > { %v2424_v13 = vmul.f32 %v3354_v61, %v2423_v25 }
 0x49a   : > { %v2425_v48 = vmul.f32 0.5, %v2424_v13 }
 0x49c   : > { %v2426_v52 = vsub.f32 1.5, %v2425_v48 }
 0x49e   : > { %v2427_v30 = vmul.f32 %v3354_v61, %v2426_v52 }
 0x4a0   : > { %v2431_v50 = vsel %vm2430_vm1, %v3354_v61, %v2427_v30 }
 0x4a1   : > { %v2432_v0 = vmul.f32 %v2431_v50, %v2414_v51 }
 0x4a3   : > { %v2433_v45 = vmul.f32 %v2432_v0, %v2416_v35  ;;  %v2436_v39 = vperm.slane %v2432_v0, 0 }
 0x4a5   : > { %2443 = vrot.lane.b32.xlu2 %v2436_v39, %s3555_s20  ;;  %2440 = vrot.lane.b32.xlu1 %v2436_v39, %s3553_s1  ;;  %v2434_v32 = vsub.f32 %v2415_v12, %v2433_v45 }
 0x4a6   : > { %2437 = vrot.lane.b32.xlu0 %v2436_v39, %s3554_s15 }
 0x4a7   : > { %v2459_v54 = vperm.slane %v2434_v32, 0 }
 0x4ad   : > { %2466 = vrot.lane.b32.xlu2 %v2459_v54, %s3555_s20  ;;  %2463 = vrot.lane.b32.xlu1 %v2459_v54, %s3553_s1  ;;  %s3200_s20 = sshll.u32 %s3630_s13, 5 }
 0x4ae   : > { %2460 = vrot.lane.b32.xlu0 %v2459_v54, %s3554_s15  ;;  %s4816_s15 = scalar_lea.vmem [#allocation8], %s2774_s5  ;;  %s2669_s29 = scalar_lea.hbm %s4873_s9, %s3200_s20 }
 0x4af   : > { %s2670_s13 = sshll.u32 %s4816_s15, 4  ;;  %s2672_s19 = sshll.u32 %s2669_s29, 4  ;;  %s2671_s13 = int_to_ptr.vmem [resolvable:$true] %s2670_s13  ;;  %s2673_s19 = int_to_ptr.hbm [resolvable:$true] %s2672_s19 }
 0x4b0   : > { %s3491_s27 = sshra.s32 %s2673_s19, 4  ;;  %s3492_s27 = int_to_ptr.hbm [resolvable:$true] %s3491_s27 }
 0x4b1   : > { %s3493_s18 = scalar_lea.hbm %s3492_s27, 32  ;;  %p3498_p11 = scmp.lt.s32.totalorder %s3492_s27, %s4873_s9 }
 0x4b2   : > { %p3494_p1 = scmp.ne.s32.totalorder %s3492_s27, %s3493_s18  ;;  %p3499_p2 = scmp.lt.s32.totalorder %s3497_s25, %s3493_s18 }
 0x4b4   : > { %p3495_p4 = pnand %p3494_p1, %p3681_p3  ;;  %p3500_p9 = por %p3499_p2, %p3498_p11 }
 0x4b6   : > { %p3496_p8 = pneg %p3495_p4 }
 0x4b8   : > { %p3501_p10 = pnand %p3500_p9, %p3496_p8 }
 0x4ff   : > { %v2444_v37 = vpop.permute.xlu2 %2443 }
 0x507   : > { %v2467_v56 = vpop.permute.xlu2 %2466 }
 0x517   : > { %v2441_v62 = vpop.permute.xlu1 %2440 }
 0x518   : > { %v2438_v41 = vpop.permute.xlu0 %2437 }
 0x519   : > { %v2446_v57 = vsel %vm4940_vm7, %v2432_v0, %v2438_v41 }
 0x51a   : > { %v2447_v58 = vsel %vm4941_vm5, %v2446_v57, %v2441_v62 }
 0x51b   : > { %v2448_v28 = vsel %vm4942_vm8, %v2447_v58, %v2444_v37 }
 0x51c   : > { %v2449_v4 = vperm.slane %v2448_v28, 0 }
 0x51e   : > { %v2450_v38 = vmul.f32 %v2449_v4, %v4575_v3  ;;  %v2451_v53 = vmul.f32 %v2449_v4, %v4573_v60  ;;  %v2452_v24 = vmul.f32 %v2449_v4, %v4577_v10  ;;  %v2453_v8 = vmul.f32 %v2449_v4, %v4582_v29 }
 0x51f   : > { %v2464_v31 = vpop.permute.xlu1 %2463  ;;  %v2454_v19 = vmul.f32 %v2449_v4, %v4591_v6  ;;  %v2455_v7 = vmul.f32 %v2449_v4, %v4596_v59  ;;  %v2456_v3 = vmul.f32 %v2449_v4, %v4601_v1  ;;  %v2457_v10 = vmul.f32 %v2449_v4, %v4610_v55 }
 0x520   : > { %v2461_v20 = vpop.permute.xlu0 %2460 }
 0x521   : > { %v2469_v21 = vsel %vm4943_vm9, %v2434_v32, %v2461_v20 }
 0x522   : > { %v2470_v34 = vsel %vm4944_vm10, %v2469_v21, %v2464_v31 }
 0x523   : > { %v2471_v63 = vsel %vm4945_vm11, %v2470_v34, %v2467_v56 }
 0x524   : > { %v2472_v22 = vperm.slane %v2471_v63, 0 }
 0x526   : > { %v4647_v27 = vadd.f32 %v2472_v22, %v2450_v38  ;;  %v4649_v5 = vadd.f32 %v2472_v22, %v2451_v53  ;;  %v4651_v2 = vadd.f32 %v2472_v22, %v2452_v24  ;;  %v4653_v11 = vadd.f32 %v2472_v22, %v2453_v8 }
 0x527   : > { %v4656_v16 = vadd.f32 %v2472_v22, %v2454_v19  ;;  %v4658_v60 = vadd.f32 %v2472_v22, %v2455_v7  ;;  %v4664_v47 = vadd.f32 %v2472_v22, %v2456_v3  ;;  %v4667_v9 = vadd.f32 %v2472_v22, %v2457_v10 }
 0x528   : > { %v3106_v29 = vmul.f32 -1.442695, %v4647_v27  ;;  %v3107_v6 = vmul.f32 -1.442695, %v4649_v5  ;;  %v3108_v59 = vmul.f32 -1.442695, %v4651_v2 }
 0x529   : > { %v3109_v18 = vmul.f32 -1.442695, %v4653_v11  ;;  %v3110_v1 = vmul.f32 -1.442695, %v4656_v16  ;;  %v3111_v43 = vmul.f32 -1.442695, %v4658_v60 }
 0x52a   : > { %3355 = vpow2.f32 %v3106_v29  ;;  %v3112_v55 = vmul.f32 -1.442695, %v4664_v47  ;;  %v3113_v26 = vmul.f32 -1.442695, %v4667_v9 }
 0x52b   : > { %3357 = vpow2.f32 %v3107_v6 }
 0x52c   : > { %3359 = vpow2.f32 %v3108_v59 }
 0x52d   : > { %3361 = vpow2.f32 %v3109_v18 }
 0x52e   : > { %3363 = vpow2.f32 %v3110_v1 }
 0x52f   : > { %3365 = vpow2.f32 %v3111_v43 }
 0x530   : > { %v3356_v40 = vpop.eup %3355  ;;  %3367 = vpow2.f32 %v3112_v55 }
 0x531   : > { %v3358_v15 = vpop.eup %3357  ;;  %v4673_v46 = vadd.f32 1.0, %v3356_v40  ;;  %3369 = vpow2.f32 %v3113_v26 }
 0x532   : > { %v3360_v23 = vpop.eup %3359  ;;  %v4675_v36 = vadd.f32 1.0, %v3358_v15 }
 0x533   : > { %v3362_v33 = vpop.eup %3361  ;;  %v4677_v35 = vadd.f32 1.0, %v3360_v23  ;;  %3371 = vrcp.f32 %v4673_v46  ;;  %v2524_v14 = vand.u32 2147483648, %v4673_v46  ;;  %vm2518_vm13 = vweird.f32 %v4673_v46 }
 0x534   : > { %v3364_v17 = vpop.eup %3363  ;;  %v4680_v42 = vadd.f32 1.0, %v3362_v33  ;;  %3373 = vrcp.f32 %v4675_v36  ;;  %v2539_v25 = vand.u32 2147483648, %v4675_v36  ;;  %v2522_v51 = vand.u32 2147483647, %v4673_v46 }
 0x535   : > { %v3366_v49 = vpop.eup %3365  ;;  %v4683_v44 = vadd.f32 1.0, %v3364_v17  ;;  %3375 = vrcp.f32 %v4677_v35  ;;  %v2525_v0 = vor.u32 1.1754944e-38, %v2524_v14  ;;  %vm2533_vm6 = vweird.f32 %v4675_v36 }
 0x536   : > { %v3368_v61 = vpop.eup %3367  ;;  %v4688_v48 = vadd.f32 1.0, %v3366_v49  ;;  %3377 = vrcp.f32 %v4680_v42  ;;  %v2537_v45 = vand.u32 2147483647, %v4675_v36  ;;  %v2554_v39 = vand.u32 2147483648, %v4677_v35 }
 0x537   : > { %v3370_v13 = vpop.eup %3369  ;;  %3379 = vrcp.f32 %v4683_v44  ;;  %v4703_v12 = vadd.f32 1.0, %v3368_v61  ;;  %v2540_v54 = vor.u32 1.1754944e-38, %v2539_v25  ;;  %vm2548_vm4 = vweird.f32 %v4677_v35 }
 0x538   : > { %v2552_v62 = vand.u32 2147483647, %v4677_v35  ;;  %v4711_v41 = vadd.f32 1.0, %v3370_v13  ;;  %v2567_v58 = vand.u32 2147483647, %v4680_v42  ;;  %3381 = vrcp.f32 %v4688_v48 }
 0x539   : > { %v4691_v52 = vpop.eup %3371  ;;  %vm4716_vm2 = vcmp.eq.f32.partialorder %v2522_v51, 8.507059e+37  ;;  %vm2563_vm12 = vweird.f32 %v4680_v42  ;;  %v2569_v20 = vand.u32 2147483648, %v4680_v42  ;;  %vm4725_vm14 = vcmp.eq.f32.partialorder %v2537_v45, 8.507059e+37 }
 0x53a   : > { %v4696_v30 = vpop.eup %3373  ;;  %v2514_v50 = vmul.f32 %v4691_v52, %v4673_v46  ;;  %vm2519_vm3 = vweird.f32 %v4691_v52  ;;  %v2555_v63 = vor.u32 1.1754944e-38, %v2554_v39  ;;  %vm2578_vm15 = vweird.f32 %v4683_v44 }
 0x53b   : > { %v2529_v32 = vmul.f32 %v4696_v30, %v4675_v36  ;;  %v4709_v37 = vpop.eup %3375  ;;  %v2582_v38 = vand.u32 2147483647, %v4683_v44  ;;  %vm2534_vm0 = vweird.f32 %v4696_v30  ;;  %vm4733_vm1 = vcmp.eq.f32.partialorder %v2552_v62, 8.507059e+37  ;;  %vm4752_vm8 = vmor %vm2518_vm13, %vm2519_vm3 }
 0x53c   : > { %v2515_v57 = vsub.f32 1.0, %v2514_v50  ;;  %v2544_v31 = vmul.f32 %v4709_v37, %v4677_v35  ;;  %v3378_v21 = vpop.eup %3377  ;;  %vm4739_vm7 = vcmp.eq.f32.partialorder %v2567_v58, 8.507059e+37  ;;  %v2584_v29 = vand.u32 2147483648, %v4683_v44  ;;  %vm4768_vm10 = vmor %vm2533_vm6, %vm2534_vm0 }
 0x53d   : > { %v2530_v4 = vsub.f32 1.0, %v2529_v32  ;;  %v3380_v22 = vpop.eup %3379  ;;  %v2559_v19 = vmul.f32 %v3378_v21, %v4680_v42  ;;  %vm2549_vm5 = vweird.f32 %v4709_v37  ;;  %v2570_v55 = vor.u32 1.1754944e-38, %v2569_v20 }
 0x53e   : > { %v2516_v56 = vmul.f32 %v4691_v52, %v2515_v57  ;;  %v2545_v24 = vsub.f32 1.0, %v2544_v31  ;;  %v2574_v10 = vmul.f32 %v3380_v22, %v4683_v44  ;;  %v3382_v1 = vpop.eup %3381  ;;  %vm4756_vm9 = vcmp.eq.f32.partialorder %v2582_v38, 8.507059e+37  ;;  %vm4778_vm13 = vmor %vm2548_vm4, %vm2549_vm5 }
 0x53f   : > { %v2531_v53 = vmul.f32 %v4696_v30, %v2530_v4  ;;  %v2560_v18 = vsub.f32 1.0, %v2559_v19  ;;  %3383 = vrcp.f32 %v4703_v12  ;;  %vm2564_vm11 = vweird.f32 %v3378_v21 }
 0x540   : > { %v2517_v7 = vadd.f32 %v4691_v52, %v2516_v56  ;;  %v2546_v59 = vmul.f32 %v4709_v37, %v2545_v24  ;;  %v2575_v26 = vsub.f32 1.0, %v2574_v10  ;;  %vm2579_vm3 = vweird.f32 %v3380_v22  ;;  %vm2565_vm6 = vmor %vm2563_vm12, %vm2564_vm11 }
 0x541   : > { %v2532_v6 = vadd.f32 %v4696_v30, %v2531_v53  ;;  %v2561_v33 = vmul.f32 %v3378_v21, %v2560_v18  ;;  %v2589_v36 = vmul.f32 %v3382_v1, %v4688_v48  ;;  %v2585_v13 = vor.u32 1.1754944e-38, %v2584_v29  ;;  %vm2580_vm4 = vmor %vm2578_vm15, %vm2579_vm3 }
 0x542   : > { %v2521_v15 = vsel %vm4752_vm8, %v4691_v52, %v2517_v7  ;;  %v2547_v23 = vadd.f32 %v4709_v37, %v2546_v59  ;;  %v2576_v14 = vmul.f32 %v3380_v22, %v2575_v26  ;;  %v2597_v52 = vand.u32 2147483647, %v4688_v48 }
 0x543   : > { %v2536_v17 = vsel %vm4768_vm10, %v4696_v30, %v2532_v6  ;;  %v2562_v25 = vadd.f32 %v3378_v21, %v2561_v33  ;;  %v2526_v51 = vsel %vm4716_vm2, %v2525_v0, %v2521_v15  ;;  %v2590_v30 = vsub.f32 1.0, %v2589_v36 }
 0x544   : > { %v2551_v61 = vsel %vm4778_vm13, %v4709_v37, %v2547_v23  ;;  %v2577_v35 = vadd.f32 %v3380_v22, %v2576_v14  ;;  %v2599_v50 = vand.u32 2147483648, %v4688_v48  ;;  %v2541_v45 = vsel %vm4725_vm14, %v2540_v54, %v2536_v17 }
 0x545   : > { %v2566_v39 = vsel %vm2565_vm6, %v3378_v21, %v2562_v25  ;;  %vm2594_vm0 = vweird.f32 %v3382_v1  ;;  %3385 = vrcp.f32 %v4711_v41  ;;  %v3384_v32 = vpop.eup %3383  ;;  %v2556_v0 = vsel %vm4733_vm1, %v2555_v63, %v2551_v61 }
 0x546   : > { %v2571_v42 = vsel %vm4739_vm7, %v2570_v55, %v2566_v39  ;;  %v2581_v62 = vsel %vm2580_vm4, %v3380_v22, %v2577_v35  ;;  %v2591_v37 = vmul.f32 %v3382_v1, %v2590_v30  ;;  %vm2593_vm2 = vweird.f32 %v4688_v48 }
 0x547   : > { %v2586_v57 = vsel %vm4756_vm9, %v2585_v13, %v2581_v62  ;;  %v2604_v44 = vmul.f32 %v3384_v32, %v4703_v12  ;;  %vm2598_vm12 = vcmp.eq.f32.partialorder %v2597_v52, 8.507059e+37  ;;  %v2633_v58 = vmul.f32 %v2526_v51, %v4647_v27  ;;  %vm2595_vm14 = vmor %vm2593_vm2, %vm2594_vm0 }
 0x548   : > { %v2592_v54 = vadd.f32 %v3382_v1, %v2591_v37  ;;  %v2634_v28 = vmul.f32 %v2541_v45, %v4649_v5  ;;  %v2600_v4 = vor.u32 1.1754944e-38, %v2599_v50  ;;  %v2635_v20 = vmul.f32 %v2556_v0, %v4651_v2 }
 0x549   : > { %v2605_v31 = vsub.f32 1.0, %v2604_v44  ;;  %v2636_v21 = vmul.f32 %v2571_v42, %v4653_v11  ;;  %v2614_v34 = vand.u32 2147483648, %v4703_v12  ;;  %v2637_v48 = vmul.f32 %v2586_v57, %v4656_v16 }
 0x54a   : > { %v2596_v56 = vsel %vm2595_vm14, %v3382_v1, %v2592_v54  ;;  %v3204_v63 = vpack.c.bf16 %v2634_v28, %v2633_v58  ;;  %vm2609_vm15 = vweird.f32 %v3384_v32  ;;  %v2612_v5 = vand.u32 2147483647, %v4703_v12 }
 0x54b   : > { %v3386_v38 = vpop.eup %3385  ;;  %v2601_v22 = vsel %vm2598_vm12, %v2600_v4, %v2596_v56  ;;  %v2606_v53 = vmul.f32 %v3384_v32, %v2605_v31  ;;  %v3209_v27 = vpack.c.bf16 %v2636_v21, %v2635_v20  ;;  %vm2608_vm1 = vweird.f32 %v4703_v12 }
 0x54c   : > { %v2619_v24 = vmul.f32 %v3386_v38, %v4711_v41  ;;  %v2638_v2 = vmul.f32 %v2601_v22, %v4658_v60  ;;  %3205 = vst [vmem:[%s4816_s15] sm:$0xff] %v3204_v63   ;;  %vm2610_vm7 = vmor %vm2608_vm1, %vm2609_vm15  ;;  %v2615_v7 = vor.u32 1.1754944e-38, %v2614_v34  ;;  %v2629_v3 = vand.u32 2147483648, %v4711_v41 }
 0x54d   : > { %v2607_v11 = vadd.f32 %v3384_v32, %v2606_v53  ;;  %3221 = vst [vmem:[%s4816_s15 + $0x8] sm:$0xff] %v3209_v27   ;;  %vm2613_vm5 = vcmp.eq.f32.partialorder %v2612_v5, 8.507059e+37  ;;  %vm2624_vm8 = vweird.f32 %v3386_v38  ;;  %v2627_v10 = vand.u32 2147483647, %v4711_v41 }
 0x54e   : > { %v2620_v16 = vsub.f32 1.0, %v2619_v24  ;;  %v3214_v8 = vpack.c.bf16 %v2638_v2, %v2637_v48  ;;  %vm2623_vm9 = vweird.f32 %v4711_v41  ;;  %v2630_v12 = vor.u32 1.1754944e-38, %v2629_v3 }
 0x54f   : > { %v2611_v19 = vsel %vm2610_vm7, %v3384_v32, %v2607_v11  ;;  %vm2625_vm10 = vmor %vm2623_vm9, %vm2624_vm8  ;;  %vm2628_vm11 = vcmp.eq.f32.partialorder %v2627_v10, 8.507059e+37 }
 0x550   : > { %v2621_v60 = vmul.f32 %v3386_v38, %v2620_v16  ;;  %3222 = vst [vmem:[%s4816_s15 + $0x10] sm:$0xff] %v3214_v8   ;;  %v2616_v29 = vsel %vm2613_vm5, %v2615_v7, %v2611_v19 }
 0x551   : > { %v2639_v18 = vmul.f32 %v2616_v29, %v4664_v47 }
 0x552   : > { %v2622_v6 = vadd.f32 %v3386_v38, %v2621_v60 }
 0x554   : > { %v2626_v59 = vsel %vm2625_vm10, %v3386_v38, %v2622_v6 }
 0x555   : > { %v2631_v1 = vsel %vm2628_vm11, %v2630_v12, %v2626_v59 }
 0x556   : > { %v2640_v43 = vmul.f32 %v2631_v1, %v4667_v9 }
 0x558   : > { %v3219_v55 = vpack.c.bf16 %v2640_v43, %v2639_v18 }
 0x55a   : > { %3223 = vst [vmem:[%s4816_s15 + $0x18] sm:$0xff] %v3219_v55  }
 0x55b   : > { %3504 = shalt.err (!%p3501_p10)
}
 0x55c   : > { %s3558_s24 = smov 4  }
 0x55d   : > { %3250 = dma.vmem_to_hbm [thread:$0]  (%p3681_p3), %s2671_s13, 512, %s2673_s19, %s2658_s23, %s3553_s1, %s3553_s1, %s3558_s24  }
 0x55e PF: > { %s2687_s15 = sand.u32 1, %s3535_s30   ;;  %p4962_p12 = scmp.ge.s32.totalorder %s3547_s12, 2 }
 0x55f   : > { %s2688_s5 = scalar_lea.sflag [#allocation4], %s2687_s15 }
 0x560   : > { %p3264_p13 = pnand %p4962_p12, %p3644_p6 }
 0x562   : > { %p3265_p0 = pneg %p3264_p13 }
 0x564   : > { %3530 = dma.done.wait (%p3265_p0), %s2688_s5, 512  }
 0x565   : > { %3532 = vsyncadd (%p3265_p0), %s2688_s5, 4294966784  ;;  %s4963_s22 = sld [smem:[#allocation12_spill]]  ;;  %p23_p5 = scmp.ge.s32.totalorder %s3671_s14, 4  }
 0x566   : > { %s4964_s30 = smov %s3539_s10  ;;  %s4965_s10 = smov %s3543_s11 }
 0x567   : > { %s4967_s12 = smov %s3671_s14  ;;  %25 = sbr.rel (!%p23_p5) target bundleno = 9 (0x9), region = 117 }
 0x56b   : > { %s4966_s11 = smov %s4963_s22 }
 0x56c   :  { %2694 = vsyncpa [#allocation3], 1 }
 0x56d   :  { %2696 = vsyncpa [#allocation3 + $0x1], 1 }
 0x56e   :  { %2697 = vsyncpa [#allocation6], 1 }
 0x56f   :  { %2698 = vsyncpa [#allocation4], 1 }
 0x570   :  { %2700 = vsyncpa [#allocation4 + $0x1], 1 }

</bundles_post_ra>
